<compile_context>
chip_gen: v7x
topology: tpu7x:2x2x1
jax: 0.10.0
libtpu: 0.0.40
codegen_flags: <defaults>
</compile_context>

<pallas_src>
import functools

import jax
import jax.numpy as jnp
from jax.experimental import pallas as pl
from jax.experimental.pallas import tpu as pltpu

LANES = 128
TILE_UNIT = 256          # batch-tile granularity: full MXU column pushes on v6e/v7x
MAX_BATCH_TILE = 8192    # keeps VMEM comfortably under v5e's 16 MiB default scoped limit


def _cdiv(a, b):
    return -(-a // b)


def _round_up(n, m):
    return _cdiv(n, m) * m


def _tensorcores_per_chip():
    """2 on v7x (megacore split pays off); 1 on v5e/v6e (grid is a serial loop)."""
    try:
        kind = jax.devices()[0].device_kind.lower()
    except Exception:
        return 1
    return 2 if "v7" in kind else 1


def _select_batch_tiling(batch, batch_tile, num_cores):
    """Returns (tb, padded_batch, grid_len).

    tb is a multiple of TILE_UNIT; on 2-TensorCore chips the grid length is even so the
    'parallel' grid axis shards evenly across cores; on single-core chips we pick the
    fewest/largest tiles possible (often grid length 1)."""
    cap = _round_up(min(batch_tile, MAX_BATCH_TILE), TILE_UNIT)
    bp0 = _round_up(batch, TILE_UNIT)
    if num_cores >= 2 and bp0 >= 2 * TILE_UNIT:
        n_tiles = 2 * _cdiv(bp0, 2 * cap)                 # even grid for 2 TCs
        tb = _round_up(_cdiv(bp0, n_tiles), TILE_UNIT)
    else:
        tb = min(bp0, cap)
        n_tiles = _cdiv(bp0, tb)
    return tb, tb * n_tiles, n_tiles


def _mlp_kernel(x_ref,
                w1_ref, b1_ref,
                w2_ref, b2_ref,
                w3_ref, b3_ref,
                w4_ref, b4_ref,
                o_ref):
    """Fused 5-matmul MLP forward for one batch tile (batch on lanes, weights resident)."""
    f32 = jnp.float32
    cdt = x_ref.dtype                      # compute dtype fed to the MXU (bf16)

    x = x_ref[...]                         # [S, tb]

    # first_layer: Linear + (Dropout=id) + ReLU
    h = jnp.dot(w1_ref[...], x, preferred_element_type=f32) + b1_ref[...]
    h = jnp.maximum(h, 0.0).astype(cdt)    # [4S, tb]

    # layers applied twice (shared weights): Linear + (Dropout=id) + ReLU
    w2 = w2_ref[...]
    b2 = b2_ref[...]
    h = jnp.dot(w2, h, preferred_element_type=f32) + b2
    h = jnp.maximum(h, 0.0).astype(cdt)
    h = jnp.dot(w2, h, preferred_element_type=f32) + b2
    h = jnp.maximum(h, 0.0).astype(cdt)

    # last_layer: Linear + (Dropout=id) + ReLU + Linear
    h = jnp.dot(w3_ref[...], h, preferred_element_type=f32) + b3_ref[...]
    h = jnp.maximum(h, 0.0).astype(cdt)    # [4A, tb]
    out = jnp.dot(w4_ref[...], h, preferred_element_type=f32) + b4_ref[...]

    o_ref[...] = out.astype(o_ref.dtype)   # [A, tb] f32, lane-dense store


@functools.partial(jax.jit, static_argnames=("batch_tile", "compute_dtype"))
def neural_net_forward(x, params, *, batch_tile=4096, compute_dtype=jnp.bfloat16):
    """x: [B, states]. params: dict (ideally from prepare_params). Returns [B, actions]."""
    B, S = x.shape
    A = params["w4"].shape[0]

    tb, Bp, grid_len = _select_batch_tiling(B, batch_tile, _tensorcores_per_chip())

    # Operand prep. Under jit the transpose/cast/pad fuse into one small op; with
    # prepare_params() the weight/bias casts below are no-ops and are elided entirely.
    xt = x.T.astype(compute_dtype)               # [S, B], batch on lanes
    if Bp != B:
        xt = jnp.pad(xt, ((0, 0), (0, Bp - B)))  # zero-pad batch tail
    w1, w2, w3, w4 = (params[k].astype(compute_dtype) for k in ("w1", "w2", "w3", "w4"))
    b1, b2, b3, b4 = (params[k].astype(jnp.float32) for k in ("b1", "b2", "b3", "b4"))

    def full_spec(arr):                          # whole (tiny) resident array every step
        nd = arr.ndim
        return pl.BlockSpec(arr.shape, lambda i, _nd=nd: (0,) * _nd)

    out_t = pl.pallas_call(
        _mlp_kernel,
        out_shape=jax.ShapeDtypeStruct((A, Bp), jnp.float32),
        grid_spec=pltpu.PrefetchScalarGridSpec(
            num_scalar_prefetch=0,
            grid=(grid_len,),
            in_specs=[
                pl.BlockSpec((S, tb), lambda i: (0, i)),   # x tile: batch on lanes
                full_spec(w1), full_spec(b1),
                full_spec(w2), full_spec(b2),
                full_spec(w3), full_spec(b3),
                full_spec(w4), full_spec(b4),
            ],
            out_specs=pl.BlockSpec((A, tb), lambda i: (0, i)),
        ),
        compiler_params=pltpu.CompilerParams(
            dimension_semantics=("parallel",),
        ),
    )(xt, w1, b1, w2, b2, w3, b3, w4, b4)

    return out_t[:, :B].T.astype(x.dtype)        # [B, A]


def init_params(key, states, actions):
    """Deterministic PyTorch-nn.Linear-style init (U[-1/sqrt(fan_in), 1/sqrt(fan_in)]).

    Weights in PyTorch-native [out, in] layout; biases as [out, 1]."""
    hid = states * 4
    ah = actions * 4
    specs = [
        ("w1", (hid, states)), ("b1", (hid, 1)),
        ("w2", (hid, hid)),    ("b2", (hid, 1)),
        ("w3", (ah, hid)),     ("b3", (ah, 1)),
        ("w4", (actions, ah)), ("b4", (actions, 1)),
    ]
    fan_in = {"w1": states, "b1": states, "w2": hid, "b2": hid,
              "w3": hid, "b3": hid, "w4": ah, "b4": ah}
    params = {}
    for (name, shape), k in zip(specs, jax.random.split(key, len(specs))):
        bound = 1.0 / (fan_in[name] ** 0.5)
        params[name] = jax.random.uniform(
            k, shape, dtype=jnp.float32, minval=-bound, maxval=bound)
    return params


def prepare_params(params, compute_dtype=jnp.bfloat16):
    """One-time pre-cast (bf16 weights, f32 biases) — hoists per-call dtype casts out
    of the hot path so the jitted forward launches no standalone cast kernels."""
    return {k: v.astype(compute_dtype if k.startswith("w") else jnp.float32)
            for k, v in params.items()}


def reference_forward(x, p, compute_dtype=jnp.bfloat16):
    """Plain-JAX reference (eval-mode dropout = identity) mirroring the kernel's
    bf16-operand / f32-accumulate cast chain."""
    f32 = jnp.float32
    cd = compute_dtype

    def linear(h, w, b):
        return (jnp.dot(h.astype(cd), w.astype(cd).T, preferred_element_type=f32)
                + b.reshape(1, -1).astype(f32))

    h = jnp.maximum(linear(x, p["w1"], p["b1"]), 0.0)
    h = jnp.maximum(linear(h, p["w2"], p["b2"]), 0.0)
    h = jnp.maximum(linear(h, p["w2"], p["b2"]), 0.0)
    h = jnp.maximum(linear(h, p["w3"], p["b3"]), 0.0)
    out = linear(h, p["w4"], p["b4"])
    return out.astype(x.dtype)


if __name__ == "__main__":
    STATES = 16
    ACTIONS = 4

    key = jax.random.PRNGKey(0)
    kx, kp = jax.random.split(key)
    raw_params = init_params(kp, STATES, ACTIONS)
    params = prepare_params(raw_params)          # hoisted one-time casts

    # Cover: large batch (single big tile / 2-way split on v7x), tiny padded batch,
    # ragged batch, and a forced multi-step grid (small batch_tile).
    cases = [(1024, 4096), (8, 4096), (300, 4096), (1024, 256)]
    for batch, bt in cases:
        x = jax.random.normal(jax.random.fold_in(kx, batch * 7 + bt),
                              (batch, STATES), dtype=jnp.float32)
        out = jax.block_until_ready(neural_net_forward(x, params, batch_tile=bt))
        ref = reference_forward(x, raw_params)
        assert out.shape == (batch, ACTIONS), out.shape
        assert jnp.allclose(out, ref, atol=2e-2, rtol=2e-2), \
            f"mismatch vs reference at B={batch}, batch_tile={bt}"

    print("KERNEL_OK")
</pallas_src>

<mosaic_0001>
module attributes {stable_mosaic.version = 11 : i64} {
  func.func @_mlp_kernel(%arg0: i32, %arg1: memref<16x1024xbf16, #tpu.memory_space<vmem>>, %arg2: memref<64x16xbf16, #tpu.memory_space<vmem>>, %arg3: memref<64x1xf32, #tpu.memory_space<vmem>>, %arg4: memref<64x64xbf16, #tpu.memory_space<vmem>>, %arg5: memref<64x1xf32, #tpu.memory_space<vmem>>, %arg6: memref<16x64xbf16, #tpu.memory_space<vmem>>, %arg7: memref<16x1xf32, #tpu.memory_space<vmem>>, %arg8: memref<4x16xbf16, #tpu.memory_space<vmem>>, %arg9: memref<4x1xf32, #tpu.memory_space<vmem>>, %arg10: memref<4x1024xf32, #tpu.memory_space<vmem>>) attributes {dimension_semantics = [#tpu.dimension_semantics<parallel>], iteration_bounds = array<i64: 1>, scalar_prefetch = 0 : i64, scratch_operands = 0 : i64, tpu.core_type = #tpu.core_type<tc>, window_params = [{transform_indices = @transform_0, window_bounds = array<i64: 16, 1024>}, {pipeline_mode = #tpu.pipeline_mode<synchronous>, transform_indices = @transform_1, window_bounds = array<i64: 64, 16>}, {pipeline_mode = #tpu.pipeline_mode<synchronous>, transform_indices = @transform_2, window_bounds = array<i64: 64, 1>}, {pipeline_mode = #tpu.pipeline_mode<synchronous>, transform_indices = @transform_3, window_bounds = array<i64: 64, 64>}, {pipeline_mode = #tpu.pipeline_mode<synchronous>, transform_indices = @transform_4, window_bounds = array<i64: 64, 1>}, {pipeline_mode = #tpu.pipeline_mode<synchronous>, transform_indices = @transform_5, window_bounds = array<i64: 16, 64>}, {pipeline_mode = #tpu.pipeline_mode<synchronous>, transform_indices = @transform_6, window_bounds = array<i64: 16, 1>}, {pipeline_mode = #tpu.pipeline_mode<synchronous>, transform_indices = @transform_7, window_bounds = array<i64: 4, 16>}, {pipeline_mode = #tpu.pipeline_mode<synchronous>, transform_indices = @transform_8, window_bounds = array<i64: 4, 1>}, {transform_indices = @transform_9, window_bounds = array<i64: 4, 1024>}]} {
    %c0 = arith.constant 0 : index
    %c0_0 = arith.constant 0 : index
    %0 = vector.load %arg1[%c0, %c0_0] : memref<16x1024xbf16, #tpu.memory_space<vmem>>, vector<16x1024xbf16>
    %c0_1 = arith.constant 0 : index
    %c0_2 = arith.constant 0 : index
    %1 = vector.load %arg2[%c0_1, %c0_2] : memref<64x16xbf16, #tpu.memory_space<vmem>>, vector<64x16xbf16>
    %cst = arith.constant dense<0.000000e+00> : vector<64x1024xf32>
    %2 = tpu.matmul %1, %0, %cst {dimension_numbers = #tpu.dot_dimension_numbers<[1], [0], [0], [1], [0, 0, 1, 1], [], []>} : vector<64x16xbf16>, vector<16x1024xbf16>, vector<64x1024xf32> -> vector<64x1024xf32>
    %c0_3 = arith.constant 0 : index
    %c0_4 = arith.constant 0 : index
    %3 = vector.load %arg3[%c0_3, %c0_4] : memref<64x1xf32, #tpu.memory_space<vmem>>, vector<64x1xf32>
    %4 = vector.broadcast %3 : vector<64x1xf32> to vector<64x1024xf32>
    %5 = arith.addf %2, %4 : vector<64x1024xf32>
    %cst_5 = arith.constant 0.000000e+00 : f32
    %6 = vector.broadcast %cst_5 : f32 to vector<64x1024xf32>
    %7 = arith.maximumf %5, %6 : vector<64x1024xf32>
    %8 = arith.truncf %7 : vector<64x1024xf32> to vector<64x1024xbf16>
    %c0_6 = arith.constant 0 : index
    %c0_7 = arith.constant 0 : index
    %9 = vector.load %arg4[%c0_6, %c0_7] : memref<64x64xbf16, #tpu.memory_space<vmem>>, vector<64x64xbf16>
    %c0_8 = arith.constant 0 : index
    %c0_9 = arith.constant 0 : index
    %10 = vector.load %arg5[%c0_8, %c0_9] : memref<64x1xf32, #tpu.memory_space<vmem>>, vector<64x1xf32>
    %cst_10 = arith.constant dense<0.000000e+00> : vector<64x1024xf32>
    %11 = tpu.matmul %9, %8, %cst_10 {dimension_numbers = #tpu.dot_dimension_numbers<[1], [0], [0], [1], [0, 0, 1, 1], [], []>} : vector<64x64xbf16>, vector<64x1024xbf16>, vector<64x1024xf32> -> vector<64x1024xf32>
    %12 = vector.broadcast %10 : vector<64x1xf32> to vector<64x1024xf32>
    %13 = arith.addf %11, %12 : vector<64x1024xf32>
    %cst_11 = arith.constant 0.000000e+00 : f32
    %14 = vector.broadcast %cst_11 : f32 to vector<64x1024xf32>
    %15 = arith.maximumf %13, %14 : vector<64x1024xf32>
    %16 = arith.truncf %15 : vector<64x1024xf32> to vector<64x1024xbf16>
    %cst_12 = arith.constant dense<0.000000e+00> : vector<64x1024xf32>
    %17 = tpu.matmul %9, %16, %cst_12 {dimension_numbers = #tpu.dot_dimension_numbers<[1], [0], [0], [1], [0, 0, 1, 1], [], []>} : vector<64x64xbf16>, vector<64x1024xbf16>, vector<64x1024xf32> -> vector<64x1024xf32>
    %18 = vector.broadcast %10 : vector<64x1xf32> to vector<64x1024xf32>
    %19 = arith.addf %17, %18 : vector<64x1024xf32>
    %cst_13 = arith.constant 0.000000e+00 : f32
    %20 = vector.broadcast %cst_13 : f32 to vector<64x1024xf32>
    %21 = arith.maximumf %19, %20 : vector<64x1024xf32>
    %22 = arith.truncf %21 : vector<64x1024xf32> to vector<64x1024xbf16>
    %c0_14 = arith.constant 0 : index
    %c0_15 = arith.constant 0 : index
    %23 = vector.load %arg6[%c0_14, %c0_15] : memref<16x64xbf16, #tpu.memory_space<vmem>>, vector<16x64xbf16>
    %cst_16 = arith.constant dense<0.000000e+00> : vector<16x1024xf32>
    %24 = tpu.matmul %23, %22, %cst_16 {dimension_numbers = #tpu.dot_dimension_numbers<[1], [0], [0], [1], [0, 0, 1, 1], [], []>} : vector<16x64xbf16>, vector<64x1024xbf16>, vector<16x1024xf32> -> vector<16x1024xf32>
    %c0_17 = arith.constant 0 : index
    %c0_18 = arith.constant 0 : index
    %25 = vector.load %arg7[%c0_17, %c0_18] : memref<16x1xf32, #tpu.memory_space<vmem>>, vector<16x1xf32>
    %26 = vector.broadcast %25 : vector<16x1xf32> to vector<16x1024xf32>
    %27 = arith.addf %24, %26 : vector<16x1024xf32>
    %cst_19 = arith.constant 0.000000e+00 : f32
    %28 = vector.broadcast %cst_19 : f32 to vector<16x1024xf32>
    %29 = arith.maximumf %27, %28 : vector<16x1024xf32>
    %30 = arith.truncf %29 : vector<16x1024xf32> to vector<16x1024xbf16>
    %c0_20 = arith.constant 0 : index
    %c0_21 = arith.constant 0 : index
    %31 = vector.load %arg8[%c0_20, %c0_21] : memref<4x16xbf16, #tpu.memory_space<vmem>>, vector<4x16xbf16>
    %cst_22 = arith.constant dense<0.000000e+00> : vector<4x1024xf32>
    %32 = tpu.matmul %31, %30, %cst_22 {dimension_numbers = #tpu.dot_dimension_numbers<[1], [0], [0], [1], [0, 0, 1, 1], [], []>} : vector<4x16xbf16>, vector<16x1024xbf16>, vector<4x1024xf32> -> vector<4x1024xf32>
    %c0_23 = arith.constant 0 : index
    %c0_24 = arith.constant 0 : index
    %33 = vector.load %arg9[%c0_23, %c0_24] : memref<4x1xf32, #tpu.memory_space<vmem>>, vector<4x1xf32>
    %34 = vector.broadcast %33 : vector<4x1xf32> to vector<4x1024xf32>
    %35 = arith.addf %32, %34 : vector<4x1024xf32>
    %c0_25 = arith.constant 0 : index
    %c0_26 = arith.constant 0 : index
    %36 = vector.load %arg10[%c0_25, %c0_26] : memref<4x1024xf32, #tpu.memory_space<vmem>>, vector<4x1024xf32>
    tpu.vector_store %arg10[%c0_25, %c0_26], %35 {strides = array<i32>} : memref<4x1024xf32, #tpu.memory_space<vmem>>, vector<4x1024xf32>,
    return
  }
  func.func @transform_0(%arg0: i32) -> (i32, i32) {
    %c0_i32 = arith.constant 0 : i32
    %c0_i32_0 = arith.constant 0 : i32
    return %c0_i32, %arg0 : i32, i32
  }
  func.func @transform_1(%arg0: i32) -> (i32, i32) {
    %c0_i32 = arith.constant 0 : i32
    %c0_i32_0 = arith.constant 0 : i32
    %c0_i32_1 = arith.constant 0 : i32
    return %c0_i32, %c0_i32_0 : i32, i32
  }
  func.func @transform_2(%arg0: i32) -> (i32, i32) {
    %c0_i32 = arith.constant 0 : i32
    %c0_i32_0 = arith.constant 0 : i32
    %c0_i32_1 = arith.constant 0 : i32
    return %c0_i32, %c0_i32_0 : i32, i32
  }
  func.func @transform_3(%arg0: i32) -> (i32, i32) {
    %c0_i32 = arith.constant 0 : i32
    %c0_i32_0 = arith.constant 0 : i32
    %c0_i32_1 = arith.constant 0 : i32
    return %c0_i32, %c0_i32_0 : i32, i32
  }
  func.func @transform_4(%arg0: i32) -> (i32, i32) {
    %c0_i32 = arith.constant 0 : i32
    %c0_i32_0 = arith.constant 0 : i32
    %c0_i32_1 = arith.constant 0 : i32
    return %c0_i32, %c0_i32_0 : i32, i32
  }
  func.func @transform_5(%arg0: i32) -> (i32, i32) {
    %c0_i32 = arith.constant 0 : i32
    %c0_i32_0 = arith.constant 0 : i32
    %c0_i32_1 = arith.constant 0 : i32
    return %c0_i32, %c0_i32_0 : i32, i32
  }
  func.func @transform_6(%arg0: i32) -> (i32, i32) {
    %c0_i32 = arith.constant 0 : i32
    %c0_i32_0 = arith.constant 0 : i32
    %c0_i32_1 = arith.constant 0 : i32
    return %c0_i32, %c0_i32_0 : i32, i32
  }
  func.func @transform_7(%arg0: i32) -> (i32, i32) {
    %c0_i32 = arith.constant 0 : i32
    %c0_i32_0 = arith.constant 0 : i32
    %c0_i32_1 = arith.constant 0 : i32
    return %c0_i32, %c0_i32_0 : i32, i32
  }
  func.func @transform_8(%arg0: i32) -> (i32, i32) {
    %c0_i32 = arith.constant 0 : i32
    %c0_i32_0 = arith.constant 0 : i32
    %c0_i32_1 = arith.constant 0 : i32
    return %c0_i32, %c0_i32_0 : i32, i32
  }
  func.func @transform_9(%arg0: i32) -> (i32, i32) {
    %c0_i32 = arith.constant 0 : i32
    %c0_i32_0 = arith.constant 0 : i32
    return %c0_i32, %arg0 : i32, i32
  }
}

</mosaic_0001>

<bundles_post_ra>
// kernel: neural_net_forward.1
= control target key start
LH: loop header
LB: loop body
LE: loop exit
PB: predicated region body
PF: predicated region fallthrough
CT: control target
= control target key end

     0   :  { %v1960_v6 = vmov 0   ;;  %vm158_vm0 = vcmask 130048   ;;  %s2525_s0 = inlined_call_operand.vmem [shape: bf16[16,1024], index: 0, kind: input, shape index: {}]   ;;  %s2526_s1 = inlined_call_operand.vmem [shape: bf16[64,16], index: 1, kind: input, shape index: {}]   ;;  %s2527_s2 = inlined_call_operand.vmem [shape: f32[64,1], index: 2, kind: input, shape index: {}]   ;;  %s2528_s3 = inlined_call_operand.vmem [shape: bf16[64,64], index: 3, kind: input, shape index: {}]   ;;  %s2529_s4 = inlined_call_operand.vmem [shape: f32[64,1], index: 4, kind: input, shape index: {}]   ;;  %s2530_s5 = inlined_call_operand.vmem [shape: bf16[16,64], index: 5, kind: input, shape index: {}]   ;;  %s2531_s6 = inlined_call_operand.vmem [shape: f32[16,1], index: 6, kind: input, shape index: {}]   ;;  %s2532_s7 = inlined_call_operand.vmem [shape: bf16[4,16], index: 7, kind: input, shape index: {}]   ;;  %s2533_s8 = inlined_call_operand.vmem [shape: f32[4,1], index: 8, kind: input, shape index: {}]   ;;  %s2534_s9 = inlined_call_operand.hbm [shape: f32[4,1024], index: 9, kind: output, shape index: {}]  }
   0x1   :  { %v34_v0 = vld [vmem:[%s2525_s0] sm:$0xff]  ;;  %v35_v2 = vld [vmem:[%s2525_s0 + $0x8] sm:$0xff]  ;;  %203 = vmatprep.mubr.bf16.mxu0 %v1960_v6  ;;  %276 = vmatprep.mubr.bf16.mxu1 %v1960_v6  ;;  %v36_v10 = vld [vmem:[%s2525_s0 + $0x10] sm:$0xff] }
   0x2   :  { %v38_v1 = vld [vmem:[%s2525_s0 + $0x20] sm:$0xff]  ;;  %v39_v4 = vld [vmem:[%s2525_s0 + $0x28] sm:$0xff]  ;;  %v40_v11 = vld [vmem:[%s2525_s0 + $0x30] sm:$0xff]  ;;  %1925 = vset.pattern.permute.xlu0 %v1960_v6  ;;  %1926 = vset.pattern.permute.xlu1 %v1960_v6 }
   0x3   :  { %v1855_v3 = vcombine.high %v34_v0, %v38_v1  ;;  %v1854_v5 = vcombine.low %v34_v0, %v38_v1  ;;  %v1857_v7 = vcombine.high %v35_v2, %v39_v4  ;;  %v1856_v8 = vcombine.low %v35_v2, %v39_v4  ;;  %v2029_v9 = vld [vmem:[%s2526_s1] sm:$0xff]   ;;  %v37_v13 = vld [vmem:[%s2525_s0 + $0x18] sm:$0xff]  ;;  %v52_v19 = vld [vmem:[%s2527_s2 + $0x10] sm:$0xff] }
   0x4   :  { %v1859_v12 = vcombine.high %v36_v10, %v40_v11  ;;  %v41_v14 = vld [vmem:[%s2525_s0 + $0x38] sm:$0xff]  ;;  %v1858_v15 = vcombine.low %v36_v10, %v40_v11  ;;  %v50_v18 = vld [vmem:[%s2527_s2] sm:$0xff]  ;;  %v51_v20 = vld [vmem:[%s2527_s2 + $0x8] sm:$0xff]  ;;  %70 = vperm.xlu1 %1926, %v52_v19  }
   0x5   :  { %171 = vmatprep.subr.bf16.mxu0 %v1855_v3  ;;  %244 = vmatprep.subr.bf16.mxu1 %v1857_v7  ;;  %v1861_v16 = vcombine.high %v37_v13, %v41_v14  ;;  %v1860_v17 = vcombine.low %v37_v13, %v41_v14  ;;  %v1928_v21 = vld [vmem:[%s2526_s1 + $0x8] sm:$0xff]   ;;  %v53_v22 = vld [vmem:[%s2527_s2 + $0x18] sm:$0xff]  ;;  %v54_v23 = vld [vmem:[%s2527_s2 + $0x20] sm:$0xff] }
   0x6   :  { %172 = vmatpush1.bf16.msra.mxu0 %v1854_v5  ;;  %245 = vmatpush1.bf16.msra.mxu1 %v1856_v8  ;;  %v55_v24 = vld [vmem:[%s2527_s2 + $0x28] sm:$0xff]  ;;  %v56_v25 = vld [vmem:[%s2527_s2 + $0x30] sm:$0xff] }
   0x7   :  { %317 = vmatprep.subr.bf16.mxu0 %v1859_v12  ;;  %390 = vmatprep.subr.bf16.mxu1 %v1861_v16 }
   0x8   :  { %60 = vperm.xlu0 %1925, %v50_v18   ;;  %75 = vperm.xlu1 %1926, %v53_v22  }
   0x9   :  { %1862 = vmatmul.mubr.msk.bf16.vlgmr.msra.gmra.mrb[0].mxu0 %vm158_vm0, %v2029_v9  ;;  %1866 = vmatmul.mubr.msk.bf16.vlgmr.msra.gmra.mrb[0].mxu1 %vm158_vm0, %v2029_v9 }
   0xa   :  { %318 = vmatpush1.bf16.msra.mxu0 %v1858_v15  ;;  %391 = vmatpush1.bf16.msra.mxu1 %v1860_v17 }
   0xb   :  { %213 = vmatprep.mubr.bf16.mxu0 %v1960_v6  ;;  %286 = vmatprep.mubr.bf16.mxu1 %v1960_v6 }
   0xc   :  { %65 = vperm.xlu0 %1925, %v51_v20  }
  0x10   :  { %80 = vperm.xlu0 %1925, %v54_v23  }
  0x11   :  { %1863 = vmatmul.mubr.msk.bf16.gmra.mrb[4].mxu0 %vm158_vm0, %v1928_v21  ;;  %1867 = vmatmul.mubr.msk.bf16.gmra.mrb[4].mxu1 %vm158_vm0, %v1928_v21 }
  0x12   :  { %223 = vmatprep.mubr.bf16.mxu0 %v1960_v6 }
  0x13   :  { %14 = vsyncpa [#allocation3], 0  ;;  %296 = vmatprep.mubr.bf16.mxu1 %v1960_v6  ;;  %85 = vperm.xlu1 %1926, %v55_v24   ;;  %v1929_v26 = vld [vmem:[%s2526_s1 + $0x10] sm:$0xff]   ;;  %v57_v27 = vld [vmem:[%s2527_s2 + $0x38] sm:$0xff]  ;;  %vm635_vm1 = vcmask 523264  }
  0x14   :  { %90 = vperm.xlu0 %1925, %v56_v25   ;;  %v567_v28 = vld [vmem:[%s2529_s4] sm:$0xff]  ;;  %v568_v29 = vld [vmem:[%s2529_s4 + $0x8] sm:$0xff]  ;;  %v569_v30 = vld [vmem:[%s2529_s4 + $0x10] sm:$0xff] }
  0x15   :  { %v1930_v31 = vld [vmem:[%s2526_s1 + $0x18] sm:$0xff]   ;;  %v571_v33 = vld [vmem:[%s2529_s4 + $0x20] sm:$0xff]  ;;  %v572_v34 = vld [vmem:[%s2529_s4 + $0x28] sm:$0xff] }
  0x16   :  { %v570_v32 = vld [vmem:[%s2529_s4 + $0x18] sm:$0xff]  ;;  %v573_v35 = vld [vmem:[%s2529_s4 + $0x30] sm:$0xff]  ;;  %v1426_v37 = vld [vmem:[%s2531_s6] sm:$0xff] }
  0x17   :  { %95 = vperm.xlu1 %1926, %v57_v27   ;;  %v574_v36 = vld [vmem:[%s2529_s4 + $0x38] sm:$0xff]  ;;  %v1427_v38 = vld [vmem:[%s2531_s6 + $0x8] sm:$0xff]  ;;  %v1643_v39 = vld [vmem:[%s2533_s8] sm:$0xf] }
  0x18   :  { %577 = vperm.xlu0 %1925, %v567_v28  }
  0x19   :  { %1864 = vmatmul.mubr.msk.bf16.gmra.mrb[8].mxu0 %vm158_vm0, %v1929_v26  ;;  %1868 = vmatmul.mubr.msk.bf16.gmra.mrb[8].mxu1 %vm158_vm0, %v1929_v26 }
  0x1a   :  { %233 = vmatprep.mubr.bf16.mxu0 %v1960_v6  ;;  %306 = vmatprep.mubr.bf16.mxu1 %v1960_v6 }
  0x1b   :  { %582 = vperm.xlu1 %1926, %v568_v29  }
  0x1c   :  { %587 = vperm.xlu0 %1925, %v569_v30  }
  0x1f   :  { %592 = vperm.xlu1 %1926, %v570_v32  }
  0x20   :  { %597 = vperm.xlu0 %1925, %v571_v33  }
  0x21   :  { %1865 = vmatmul.mubr.msk.bf16.gmra.mrb[12].mxu0 %vm158_vm0, %v1930_v31  ;;  %1869 = vmatmul.mubr.msk.bf16.gmra.mrb[12].mxu1 %vm158_vm0, %v1930_v31 }
  0x22   :  { %349 = vmatprep.mubr.bf16.mxu0 %v1960_v6  ;;  %422 = vmatprep.mubr.bf16.mxu1 %v1960_v6 }
  0x23   :  { %602 = vperm.xlu1 %1926, %v572_v34  }
  0x24   :  { %607 = vperm.xlu0 %1925, %v573_v35  }
  0x27   :  { %612 = vperm.xlu1 %1926, %v574_v36  }
  0x28   :  { %1430 = vperm.xlu0 %1925, %v1426_v37  }
  0x29   :  { %1870 = vmatmul.mubr.msk.bf16.vlgmr.msra.gmra.mrb[16].mxu0 %vm158_vm0, %v2029_v9  ;;  %1874 = vmatmul.mubr.msk.bf16.vlgmr.msra.gmra.mrb[16].mxu1 %vm158_vm0, %v2029_v9 }
  0x2a   :  { %359 = vmatprep.mubr.bf16.mxu0 %v1960_v6  ;;  %432 = vmatprep.mubr.bf16.mxu1 %v1960_v6 }
  0x2b   :  { %1435 = vperm.xlu1 %1926, %v1427_v38  }
  0x2c   :  { %1646 = vperm.xlu0 %1925, %v1643_v39  }
  0x31   :  { %1871 = vmatmul.mubr.msk.bf16.gmra.mrb[20].mxu0 %vm158_vm0, %v1928_v21  ;;  %1875 = vmatmul.mubr.msk.bf16.gmra.mrb[20].mxu1 %vm158_vm0, %v1928_v21 }
  0x32   :  { %369 = vmatprep.mubr.bf16.mxu0 %v1960_v6  ;;  %442 = vmatprep.mubr.bf16.mxu1 %v1960_v6 }
  0x39   :  { %1872 = vmatmul.mubr.msk.bf16.gmra.mrb[24].mxu0 %vm158_vm0, %v1929_v26  ;;  %1876 = vmatmul.mubr.msk.bf16.gmra.mrb[24].mxu1 %vm158_vm0, %v1929_v26 }
  0x3a   :  { %379 = vmatprep.mubr.bf16.mxu0 %v1960_v6  ;;  %452 = vmatprep.mubr.bf16.mxu1 %v1960_v6 }
  0x41   :  { %1873 = vmatmul.mubr.msk.bf16.gmra.mrb[28].mxu0 %vm158_vm0, %v1930_v31  ;;  %1877 = vmatmul.mubr.msk.bf16.gmra.mrb[28].mxu1 %vm158_vm0, %v1930_v31 }
  0x42   :  { %680 = vmatprep.mubr.bf16.mxu0 %v1960_v6  ;;  %753 = vmatprep.mubr.bf16.mxu1 %v1960_v6 }
  0x83   :  { %v2149_v41 = vpop.permute.xlu1 %70 }
  0x87   :  { %v2147_v40 = vpop.permute.xlu0 %60  ;;  %v2161_v4 = vpop.permute.xlu1 %75 }
  0x8b   :  { %v2151_v42 = vpop.permute.xlu0 %65 }
  0x8f   :  { %v2171_v31 = vpop.permute.xlu0 %80 }
  0x92   :  { %v2173_v35 = vpop.permute.xlu1 %85 }
  0xdc   :  { %v205_v43 = vpop.f32.mrb[0].mxu0  ;;  %v278_v45 = vpop.f32.mrb[0].mxu1 }
  0xdd   :  { %v206_v44 = vadd.f32 %v205_v43, %v2147_v40  ;;  %v207_v46 = vpop.f32.mrb[1].mxu0  ;;  %v279_v47 = vadd.f32 %v278_v45, %v2147_v40  ;;  %v280_v49 = vpop.f32.mrb[1].mxu1 }
  0xde   :  { %v208_v48 = vadd.f32 %v207_v46, %v2147_v40  ;;  %v209_v50 = vpop.f32.mrb[2].mxu0  ;;  %v281_v51 = vadd.f32 %v280_v49, %v2147_v40  ;;  %v282_v53 = vpop.f32.mrb[2].mxu1 }
  0xdf   :  { %v210_v52 = vadd.f32 %v209_v50, %v2151_v42  ;;  %v211_v54 = vpop.f32.mrb[3].mxu0  ;;  %v283_v55 = vadd.f32 %v282_v53, %v2151_v42  ;;  %v284_v57 = vpop.f32.mrb[3].mxu1  ;;  %v463_v58 = vmax.f32 %v206_v44, 0.0  ;;  %v465_v61 = vmax.f32 %v279_v47, 0.0 }
  0xe0   :  { %v212_v56 = vadd.f32 %v211_v54, %v2151_v42  ;;  %v285_v60 = vadd.f32 %v284_v57, %v2151_v42  ;;  %v464_v62 = vmax.f32 %v208_v48, 0.0  ;;  %v466_v1 = vmax.f32 %v281_v51, 0.0 }
  0xe1   :  { %v471_v59 = vmax.f32 %v210_v52, 0.0  ;;  %v473_v63 = vmax.f32 %v283_v55, 0.0 }
  0xe2   :  { %v472_v0 = vmax.f32 %v212_v56, 0.0  ;;  %v474_v3 = vmax.f32 %v285_v60, 0.0 }
  0xe3   :  { %v527_v2 = vpack.c.bf16 %v471_v59, %v463_v58  ;;  %v529_v5 = vpack.c.bf16 %v473_v63, %v465_v61 }
  0xe4   :  { %v528_v7 = vpack.c.bf16 %v472_v0, %v464_v62  ;;  %v215_v8 = vpop.f32.mrb[4].mxu0  ;;  %v530_v9 = vpack.c.bf16 %v474_v3, %v466_v1  ;;  %v288_v11 = vpop.f32.mrb[4].mxu1 }
  0xe5   :  { %v216_v10 = vadd.f32 %v215_v8, %v2149_v41  ;;  %v217_v12 = vpop.f32.mrb[5].mxu0  ;;  %v289_v13 = vadd.f32 %v288_v11, %v2149_v41  ;;  %v290_v15 = vpop.f32.mrb[5].mxu1 }
  0xe6   :  { %v218_v14 = vadd.f32 %v217_v12, %v2149_v41  ;;  %v219_v16 = vpop.f32.mrb[6].mxu0  ;;  %648 = vmatprep.subr.bf16.mxu0 %v528_v7  ;;  %v291_v17 = vadd.f32 %v290_v15, %v2149_v41  ;;  %v292_v19 = vpop.f32.mrb[6].mxu1  ;;  %721 = vmatprep.subr.bf16.mxu1 %v530_v9 }
  0xe7   :  { %v220_v18 = vadd.f32 %v219_v16, %v2161_v4  ;;  %v221_v20 = vpop.f32.mrb[7].mxu0  ;;  %649 = vmatpush1.bf16.msra.mxu0 %v527_v2  ;;  %v293_v21 = vadd.f32 %v292_v19, %v2161_v4  ;;  %v294_v23 = vpop.f32.mrb[7].mxu1  ;;  %722 = vmatpush1.bf16.msra.mxu1 %v529_v5  ;;  %v479_v24 = vmax.f32 %v216_v10, 0.0  ;;  %v481_v27 = vmax.f32 %v289_v13, 0.0 }
  0xe8   :  { %v222_v22 = vadd.f32 %v221_v20, %v2161_v4  ;;  %v295_v26 = vadd.f32 %v294_v23, %v2161_v4  ;;  %v480_v28 = vmax.f32 %v218_v14, 0.0  ;;  %v482_v32 = vmax.f32 %v291_v17, 0.0  ;;  %v2183_v0 = vpop.permute.xlu0 %90  ;;  %v2185_v5 = vpop.permute.xlu1 %95 }
  0xe9   :  { %v487_v25 = vmax.f32 %v220_v18, 0.0  ;;  %v489_v29 = vmax.f32 %v293_v21, 0.0 }
  0xea   :  { %v488_v30 = vmax.f32 %v222_v22, 0.0  ;;  %v490_v34 = vmax.f32 %v295_v26, 0.0 }
  0xeb   :  { %v535_v33 = vpack.c.bf16 %v487_v25, %v479_v24  ;;  %v537_v36 = vpack.c.bf16 %v489_v29, %v481_v27 }
  0xec   :  { %v536_v37 = vpack.c.bf16 %v488_v30, %v480_v28  ;;  %v225_v38 = vpop.f32.mrb[8].mxu0  ;;  %v538_v39 = vpack.c.bf16 %v490_v34, %v482_v32  ;;  %v298_v44 = vpop.f32.mrb[8].mxu1 }
  0xed   :  { %v226_v43 = vadd.f32 %v225_v38, %v2171_v31  ;;  %v227_v45 = vpop.f32.mrb[9].mxu0  ;;  %v299_v46 = vadd.f32 %v298_v44, %v2171_v31  ;;  %v300_v48 = vpop.f32.mrb[9].mxu1 }
  0xee   :  { %v228_v47 = vadd.f32 %v227_v45, %v2171_v31  ;;  %v229_v49 = vpop.f32.mrb[10].mxu0  ;;  %650 = vmatprep.subr.bf16.mxu0 %v536_v37  ;;  %v301_v50 = vadd.f32 %v300_v48, %v2171_v31  ;;  %v302_v52 = vpop.f32.mrb[10].mxu1  ;;  %723 = vmatprep.subr.bf16.mxu1 %v538_v39 }
  0xef   :  { %v230_v51 = vadd.f32 %v229_v49, %v2173_v35  ;;  %v231_v53 = vpop.f32.mrb[11].mxu0  ;;  %651 = vmatpush1.bf16.msra.mxu0 %v535_v33  ;;  %v303_v54 = vadd.f32 %v302_v52, %v2173_v35  ;;  %v304_v56 = vpop.f32.mrb[11].mxu1  ;;  %724 = vmatpush1.bf16.msra.mxu1 %v537_v36  ;;  %v495_v57 = vmax.f32 %v226_v43, 0.0  ;;  %v497_v60 = vmax.f32 %v299_v46, 0.0 }
  0xf0   :  { %v232_v55 = vadd.f32 %v231_v53, %v2173_v35  ;;  %v305_v59 = vadd.f32 %v304_v56, %v2173_v35  ;;  %v496_v61 = vmax.f32 %v228_v47, 0.0  ;;  %v498_v1 = vmax.f32 %v301_v50, 0.0 }
  0xf1   :  { %v503_v58 = vmax.f32 %v230_v51, 0.0  ;;  %v505_v62 = vmax.f32 %v303_v54, 0.0  ;;  %v2201_v51 = vld [vmem:[%s2528_s3] sm:$0xff]  }
  0xf2   :  { %v504_v63 = vmax.f32 %v232_v55, 0.0  ;;  %v506_v3 = vmax.f32 %v305_v59, 0.0 }
  0xf3   :  { %v543_v2 = vpack.c.bf16 %v503_v58, %v495_v57  ;;  %v545_v7 = vpack.c.bf16 %v505_v62, %v497_v60 }
  0xf4   :  { %v544_v8 = vpack.c.bf16 %v504_v63, %v496_v61  ;;  %v235_v9 = vpop.f32.mrb[12].mxu0  ;;  %v546_v10 = vpack.c.bf16 %v506_v3, %v498_v1  ;;  %v308_v12 = vpop.f32.mrb[12].mxu1 }
  0xf5   :  { %v236_v11 = vadd.f32 %v235_v9, %v2183_v0  ;;  %v237_v13 = vpop.f32.mrb[13].mxu0  ;;  %v309_v14 = vadd.f32 %v308_v12, %v2183_v0  ;;  %v310_v16 = vpop.f32.mrb[13].mxu1 }
  0xf6   :  { %v238_v15 = vadd.f32 %v237_v13, %v2183_v0  ;;  %v239_v17 = vpop.f32.mrb[14].mxu0  ;;  %652 = vmatprep.subr.bf16.mxu0 %v544_v8  ;;  %v311_v18 = vadd.f32 %v310_v16, %v2183_v0  ;;  %v312_v20 = vpop.f32.mrb[14].mxu1  ;;  %725 = vmatprep.subr.bf16.mxu1 %v546_v10 }
  0xf7   :  { %v240_v19 = vadd.f32 %v239_v17, %v2185_v5  ;;  %v241_v21 = vpop.f32.mrb[15].mxu0  ;;  %653 = vmatpush1.bf16.msra.mxu0 %v543_v2  ;;  %v313_v22 = vadd.f32 %v312_v20, %v2185_v5  ;;  %v314_v24 = vpop.f32.mrb[15].mxu1  ;;  %726 = vmatpush1.bf16.msra.mxu1 %v545_v7  ;;  %v511_v25 = vmax.f32 %v236_v11, 0.0  ;;  %v513_v28 = vmax.f32 %v309_v14, 0.0 }
  0xf8   :  { %v242_v23 = vadd.f32 %v241_v21, %v2185_v5  ;;  %v315_v27 = vadd.f32 %v314_v24, %v2185_v5  ;;  %v512_v29 = vmax.f32 %v238_v15, 0.0  ;;  %v514_v33 = vmax.f32 %v311_v18, 0.0  ;;  %v2220_v18 = vld [vmem:[%s2528_s3 + $0x8] sm:$0xff]  }
  0xf9   :  { %v519_v26 = vmax.f32 %v240_v19, 0.0  ;;  %v521_v30 = vmax.f32 %v313_v22, 0.0 }
  0xfa   :  { %v520_v32 = vmax.f32 %v242_v23, 0.0  ;;  %v522_v36 = vmax.f32 %v315_v27, 0.0 }
  0xfb   :  { %v551_v34 = vpack.c.bf16 %v519_v26, %v511_v25  ;;  %v553_v37 = vpack.c.bf16 %v521_v30, %v513_v28 }
  0xfc   :  { %v552_v38 = vpack.c.bf16 %v520_v32, %v512_v29  ;;  %v351_v39 = vpop.f32.mrb[16].mxu0  ;;  %v554_v43 = vpack.c.bf16 %v522_v36, %v514_v33  ;;  %v424_v45 = vpop.f32.mrb[16].mxu1 }
  0xfd   :  { %v352_v44 = vadd.f32 %v351_v39, %v2147_v40  ;;  %v353_v46 = vpop.f32.mrb[17].mxu0  ;;  %v425_v47 = vadd.f32 %v424_v45, %v2147_v40  ;;  %v426_v49 = vpop.f32.mrb[17].mxu1 }
  0xfe   :  { %v354_v48 = vadd.f32 %v353_v46, %v2147_v40  ;;  %v355_v50 = vpop.f32.mrb[18].mxu0  ;;  %654 = vmatprep.subr.bf16.mxu0 %v552_v38  ;;  %v427_v52 = vadd.f32 %v426_v49, %v2147_v40  ;;  %v428_v54 = vpop.f32.mrb[18].mxu1  ;;  %727 = vmatprep.subr.bf16.mxu1 %v554_v43 }
  0xff   :  { %v356_v53 = vadd.f32 %v355_v50, %v2151_v42  ;;  %v357_v55 = vpop.f32.mrb[19].mxu0  ;;  %655 = vmatpush1.bf16.msra.mxu0 %v551_v34  ;;  %v429_v56 = vadd.f32 %v428_v54, %v2151_v42  ;;  %v430_v58 = vpop.f32.mrb[19].mxu1  ;;  %728 = vmatpush1.bf16.msra.mxu1 %v553_v37  ;;  %v467_v59 = vmax.f32 %v352_v44, 0.0  ;;  %v469_v62 = vmax.f32 %v425_v47, 0.0  ;;  %v2239_v50 = vld [vmem:[%s2528_s3 + $0x10] sm:$0xff]  }
 0x100   :  { %v358_v57 = vadd.f32 %v357_v55, %v2151_v42  ;;  %v431_v61 = vadd.f32 %v430_v58, %v2151_v42  ;;  %v468_v63 = vmax.f32 %v354_v48, 0.0  ;;  %v470_v2 = vmax.f32 %v427_v52, 0.0 }
 0x101   :  { %v475_v60 = vmax.f32 %v356_v53, 0.0  ;;  %v477_v40 = vmax.f32 %v429_v56, 0.0 }
 0x102   :  { %v476_v1 = vmax.f32 %v358_v57, 0.0  ;;  %1882 = vmatmul.mubr.msk.bf16.vlgmr.msra.gmra.mrb[32].mxu0 %vm635_vm1, %v2201_v51  ;;  %v478_v7 = vmax.f32 %v431_v61, 0.0  ;;  %1886 = vmatmul.mubr.msk.bf16.vlgmr.msra.gmra.mrb[32].mxu1 %vm635_vm1, %v2201_v51 }
 0x103   :  { %v531_v3 = vpack.c.bf16 %v475_v60, %v467_v59  ;;  %690 = vmatprep.mubr.bf16.mxu0 %v1960_v6  ;;  %v533_v8 = vpack.c.bf16 %v477_v40, %v469_v62  ;;  %763 = vmatprep.mubr.bf16.mxu1 %v1960_v6 }
 0x104   :  { %v532_v9 = vpack.c.bf16 %v476_v1, %v468_v63  ;;  %v361_v10 = vpop.f32.mrb[20].mxu0  ;;  %v534_v42 = vpack.c.bf16 %v478_v7, %v470_v2  ;;  %v434_v12 = vpop.f32.mrb[20].mxu1 }
 0x105   :  { %v362_v11 = vadd.f32 %v361_v10, %v2149_v41  ;;  %v363_v13 = vpop.f32.mrb[21].mxu0  ;;  %v435_v14 = vadd.f32 %v434_v12, %v2149_v41  ;;  %v436_v16 = vpop.f32.mrb[21].mxu1 }
 0x106   :  { %v364_v15 = vadd.f32 %v363_v13, %v2149_v41  ;;  %v365_v17 = vpop.f32.mrb[22].mxu0  ;;  %794 = vmatprep.subr.bf16.mxu0 %v532_v9  ;;  %v437_v19 = vadd.f32 %v436_v16, %v2149_v41  ;;  %v438_v21 = vpop.f32.mrb[22].mxu1  ;;  %867 = vmatprep.subr.bf16.mxu1 %v534_v42  ;;  %v2258_v16 = vld [vmem:[%s2528_s3 + $0x18] sm:$0xff]  }
 0x107   :  { %v366_v20 = vadd.f32 %v365_v17, %v2161_v4  ;;  %v367_v22 = vpop.f32.mrb[23].mxu0  ;;  %795 = vmatpush1.bf16.msra.mxu0 %v531_v3  ;;  %v439_v23 = vadd.f32 %v438_v21, %v2161_v4  ;;  %v440_v25 = vpop.f32.mrb[23].mxu1  ;;  %868 = vmatpush1.bf16.msra.mxu1 %v533_v8  ;;  %v483_v26 = vmax.f32 %v362_v11, 0.0  ;;  %v485_v29 = vmax.f32 %v435_v14, 0.0 }
 0x108   :  { %v368_v24 = vadd.f32 %v367_v22, %v2161_v4  ;;  %v441_v28 = vadd.f32 %v440_v25, %v2161_v4  ;;  %v484_v30 = vmax.f32 %v364_v15, 0.0  ;;  %v486_v33 = vmax.f32 %v437_v19, 0.0 }
 0x109   :  { %v491_v27 = vmax.f32 %v366_v20, 0.0  ;;  %v493_v32 = vmax.f32 %v439_v23, 0.0 }
 0x10a   :  { %v492_v41 = vmax.f32 %v368_v24, 0.0  ;;  %1883 = vmatmul.mubr.msk.bf16.gmra.mrb[36].mxu0 %vm635_vm1, %v2220_v18  ;;  %v494_v36 = vmax.f32 %v441_v28, 0.0  ;;  %1887 = vmatmul.mubr.msk.bf16.gmra.mrb[36].mxu1 %vm635_vm1, %v2220_v18 }
 0x10b   :  { %v539_v34 = vpack.c.bf16 %v491_v27, %v483_v26  ;;  %700 = vmatprep.mubr.bf16.mxu0 %v1960_v6  ;;  %v541_v37 = vpack.c.bf16 %v493_v32, %v485_v29  ;;  %773 = vmatprep.mubr.bf16.mxu1 %v1960_v6 }
 0x10c   :  { %v540_v38 = vpack.c.bf16 %v492_v41, %v484_v30  ;;  %v371_v39 = vpop.f32.mrb[24].mxu0  ;;  %v542_v4 = vpack.c.bf16 %v494_v36, %v486_v33  ;;  %v444_v44 = vpop.f32.mrb[24].mxu1 }
 0x10d   :  { %v372_v43 = vadd.f32 %v371_v39, %v2171_v31  ;;  %v373_v45 = vpop.f32.mrb[25].mxu0  ;;  %v445_v46 = vadd.f32 %v444_v44, %v2171_v31  ;;  %v446_v48 = vpop.f32.mrb[25].mxu1 }
 0x10e   :  { %v374_v47 = vadd.f32 %v373_v45, %v2171_v31  ;;  %v375_v49 = vpop.f32.mrb[26].mxu0  ;;  %796 = vmatprep.subr.bf16.mxu0 %v540_v38  ;;  %v447_v52 = vadd.f32 %v446_v48, %v2171_v31  ;;  %v448_v54 = vpop.f32.mrb[26].mxu1  ;;  %869 = vmatprep.subr.bf16.mxu1 %v542_v4 }
 0x10f   :  { %v376_v53 = vadd.f32 %v375_v49, %v2173_v35  ;;  %v377_v55 = vpop.f32.mrb[27].mxu0  ;;  %797 = vmatpush1.bf16.msra.mxu0 %v539_v34  ;;  %v449_v56 = vadd.f32 %v448_v54, %v2173_v35  ;;  %v450_v58 = vpop.f32.mrb[27].mxu1  ;;  %870 = vmatpush1.bf16.msra.mxu1 %v541_v37  ;;  %v499_v59 = vmax.f32 %v372_v43, 0.0  ;;  %v501_v62 = vmax.f32 %v445_v46, 0.0 }
 0x110   :  { %v378_v57 = vadd.f32 %v377_v55, %v2173_v35  ;;  %v451_v61 = vadd.f32 %v450_v58, %v2173_v35  ;;  %v500_v63 = vmax.f32 %v374_v47, 0.0  ;;  %v502_v1 = vmax.f32 %v447_v52, 0.0  ;;  %v2295_v37 = vpop.permute.xlu0 %577  ;;  %v2297_v38 = vpop.permute.xlu1 %582 }
 0x111   :  { %v507_v60 = vmax.f32 %v376_v53, 0.0  ;;  %v509_v40 = vmax.f32 %v449_v56, 0.0 }
 0x112   :  { %v508_v31 = vmax.f32 %v378_v57, 0.0  ;;  %1884 = vmatmul.mubr.msk.bf16.gmra.mrb[40].mxu0 %vm635_vm1, %v2239_v50  ;;  %v510_v3 = vmax.f32 %v451_v61, 0.0  ;;  %1888 = vmatmul.mubr.msk.bf16.gmra.mrb[40].mxu1 %vm635_vm1, %v2239_v50 }
 0x113   :  { %v547_v2 = vpack.c.bf16 %v507_v60, %v499_v59  ;;  %710 = vmatprep.mubr.bf16.mxu0 %v1960_v6  ;;  %v549_v7 = vpack.c.bf16 %v509_v40, %v501_v62  ;;  %783 = vmatprep.mubr.bf16.mxu1 %v1960_v6 }
 0x114   :  { %v548_v8 = vpack.c.bf16 %v508_v31, %v500_v63  ;;  %v381_v9 = vpop.f32.mrb[28].mxu0  ;;  %v550_v35 = vpack.c.bf16 %v510_v3, %v502_v1  ;;  %v454_v42 = vpop.f32.mrb[28].mxu1 }
 0x115   :  { %v382_v10 = vadd.f32 %v381_v9, %v2183_v0  ;;  %v383_v11 = vpop.f32.mrb[29].mxu0  ;;  %v455_v12 = vadd.f32 %v454_v42, %v2183_v0  ;;  %v456_v14 = vpop.f32.mrb[29].mxu1 }
 0x116   :  { %v384_v13 = vadd.f32 %v383_v11, %v2183_v0  ;;  %v385_v15 = vpop.f32.mrb[30].mxu0  ;;  %798 = vmatprep.subr.bf16.mxu0 %v548_v8  ;;  %v457_v17 = vadd.f32 %v456_v14, %v2183_v0  ;;  %v458_v20 = vpop.f32.mrb[30].mxu1  ;;  %871 = vmatprep.subr.bf16.mxu1 %v550_v35 }
 0x117   :  { %v386_v19 = vadd.f32 %v385_v15, %v2185_v5  ;;  %v387_v21 = vpop.f32.mrb[31].mxu0  ;;  %799 = vmatpush1.bf16.msra.mxu0 %v547_v2  ;;  %v459_v22 = vadd.f32 %v458_v20, %v2185_v5  ;;  %v460_v24 = vpop.f32.mrb[31].mxu1  ;;  %872 = vmatpush1.bf16.msra.mxu1 %v549_v7  ;;  %v515_v25 = vmax.f32 %v382_v10, 0.0  ;;  %v517_v28 = vmax.f32 %v455_v12, 0.0 }
 0x118   :  { %v388_v23 = vadd.f32 %v387_v21, %v2185_v5  ;;  %v461_v27 = vadd.f32 %v460_v24, %v2185_v5  ;;  %v516_v29 = vmax.f32 %v384_v13, 0.0  ;;  %v518_v32 = vmax.f32 %v457_v17, 0.0  ;;  %v2307_v31 = vpop.permute.xlu0 %587  ;;  %v2309_v7 = vpop.permute.xlu1 %592 }
 0x119   :  { %v523_v26 = vmax.f32 %v386_v19, 0.0  ;;  %v525_v30 = vmax.f32 %v459_v22, 0.0 }
 0x11a   :  { %v524_v0 = vmax.f32 %v388_v23, 0.0  ;;  %1885 = vmatmul.mubr.msk.bf16.gmra.mrb[44].mxu0 %vm635_vm1, %v2258_v16  ;;  %v526_v33 = vmax.f32 %v461_v27, 0.0  ;;  %1889 = vmatmul.mubr.msk.bf16.gmra.mrb[44].mxu1 %vm635_vm1, %v2258_v16 }
 0x11b   :  { %v555_v41 = vpack.c.bf16 %v523_v26, %v515_v25  ;;  %826 = vmatprep.mubr.bf16.mxu0 %v1960_v6  ;;  %v557_v34 = vpack.c.bf16 %v525_v30, %v517_v28  ;;  %899 = vmatprep.mubr.bf16.mxu1 %v1960_v6 }
 0x11c   :  { %v556_v36 = vpack.c.bf16 %v524_v0, %v516_v29  ;;  %v558_v5 = vpack.c.bf16 %v526_v33, %v518_v32 }
 0x11e   :  { %800 = vmatprep.subr.bf16.mxu0 %v556_v36  ;;  %873 = vmatprep.subr.bf16.mxu1 %v558_v5  ;;  %v2321_v5 = vpop.permute.xlu1 %602 }
 0x11f   :  { %801 = vmatpush1.bf16.msra.mxu0 %v555_v41  ;;  %874 = vmatpush1.bf16.msra.mxu1 %v557_v34  ;;  %v2319_v41 = vpop.permute.xlu0 %597 }
 0x122   :  { %1890 = vmatmul.mubr.msk.bf16.vlgmr.msra.gmra.mrb[48].mxu0 %vm635_vm1, %v2201_v51  ;;  %1894 = vmatmul.mubr.msk.bf16.vlgmr.msra.gmra.mrb[48].mxu1 %vm635_vm1, %v2201_v51 }
 0x123   :  { %836 = vmatprep.mubr.bf16.mxu0 %v1960_v6  ;;  %909 = vmatprep.mubr.bf16.mxu1 %v1960_v6 }
 0x12a   :  { %1891 = vmatmul.mubr.msk.bf16.gmra.mrb[52].mxu0 %vm635_vm1, %v2220_v18  ;;  %1895 = vmatmul.mubr.msk.bf16.gmra.mrb[52].mxu1 %vm635_vm1, %v2220_v18 }
 0x12b   :  { %846 = vmatprep.mubr.bf16.mxu0 %v1960_v6  ;;  %919 = vmatprep.mubr.bf16.mxu1 %v1960_v6 }
 0x132   :  { %1892 = vmatmul.mubr.msk.bf16.gmra.mrb[56].mxu0 %vm635_vm1, %v2239_v50  ;;  %1896 = vmatmul.mubr.msk.bf16.gmra.mrb[56].mxu1 %vm635_vm1, %v2239_v50 }
 0x133   :  { %856 = vmatprep.mubr.bf16.mxu0 %v1960_v6  ;;  %929 = vmatprep.mubr.bf16.mxu1 %v1960_v6 }
 0x13a   :  { %1893 = vmatmul.mubr.msk.bf16.gmra.mrb[60].mxu0 %vm635_vm1, %v2258_v16  ;;  %1897 = vmatmul.mubr.msk.bf16.gmra.mrb[60].mxu1 %vm635_vm1, %v2258_v16 }
 0x13b   :  { %1068 = vmatprep.mubr.bf16.mxu0 %v1960_v6  ;;  %1141 = vmatprep.mubr.bf16.mxu1 %v1960_v6 }
 0x1d5   :  { %v682_v39 = vpop.f32.mrb[32].mxu0  ;;  %v755_v43 = vpop.f32.mrb[32].mxu1 }
 0x1d6   :  { %v683_v4 = vadd.f32 %v682_v39, %v2295_v37  ;;  %v684_v44 = vpop.f32.mrb[33].mxu0  ;;  %v756_v45 = vadd.f32 %v755_v43, %v2295_v37  ;;  %v757_v47 = vpop.f32.mrb[33].mxu1 }
 0x1d7   :  { %v685_v46 = vadd.f32 %v684_v44, %v2295_v37  ;;  %v686_v48 = vpop.f32.mrb[34].mxu0  ;;  %v758_v49 = vadd.f32 %v757_v47, %v2295_v37  ;;  %v759_v53 = vpop.f32.mrb[34].mxu1 }
 0x1d8   :  { %v687_v52 = vadd.f32 %v686_v48, %v2297_v38  ;;  %v688_v54 = vpop.f32.mrb[35].mxu0  ;;  %v760_v55 = vadd.f32 %v759_v53, %v2297_v38  ;;  %v761_v57 = vpop.f32.mrb[35].mxu1  ;;  %v940_v58 = vmax.f32 %v683_v4, 0.0  ;;  %v942_v61 = vmax.f32 %v756_v45, 0.0 }
 0x1d9   :  { %v689_v56 = vadd.f32 %v688_v54, %v2297_v38  ;;  %v762_v60 = vadd.f32 %v761_v57, %v2297_v38  ;;  %v941_v62 = vmax.f32 %v685_v46, 0.0  ;;  %v943_v1 = vmax.f32 %v758_v49, 0.0 }
 0x1da   :  { %v948_v59 = vmax.f32 %v687_v52, 0.0  ;;  %v950_v63 = vmax.f32 %v760_v55, 0.0 }
 0x1db   :  { %v949_v40 = vmax.f32 %v689_v56, 0.0  ;;  %v951_v3 = vmax.f32 %v762_v60, 0.0 }
 0x1dc   :  { %v1004_v2 = vpack.c.bf16 %v948_v59, %v940_v58  ;;  %v1006_v8 = vpack.c.bf16 %v950_v63, %v942_v61 }
 0x1dd   :  { %v1005_v9 = vpack.c.bf16 %v949_v40, %v941_v62  ;;  %v692_v35 = vpop.f32.mrb[36].mxu0  ;;  %v1007_v10 = vpack.c.bf16 %v951_v3, %v943_v1  ;;  %v765_v11 = vpop.f32.mrb[36].mxu1 }
 0x1de   :  { %v693_v42 = vadd.f32 %v692_v35, %v2307_v31  ;;  %v694_v12 = vpop.f32.mrb[37].mxu0  ;;  %v766_v13 = vadd.f32 %v765_v11, %v2307_v31  ;;  %v767_v15 = vpop.f32.mrb[37].mxu1 }
 0x1df   :  { %v695_v14 = vadd.f32 %v694_v12, %v2307_v31  ;;  %v696_v17 = vpop.f32.mrb[38].mxu0  ;;  %1036 = vmatprep.subr.bf16.mxu0 %v1005_v9  ;;  %v768_v19 = vadd.f32 %v767_v15, %v2307_v31  ;;  %v769_v21 = vpop.f32.mrb[38].mxu1  ;;  %1109 = vmatprep.subr.bf16.mxu1 %v1007_v10 }
 0x1e0   :  { %v697_v20 = vadd.f32 %v696_v17, %v2309_v7  ;;  %v698_v22 = vpop.f32.mrb[39].mxu0  ;;  %1037 = vmatpush1.bf16.msra.mxu0 %v1004_v2  ;;  %v770_v23 = vadd.f32 %v769_v21, %v2309_v7  ;;  %v771_v25 = vpop.f32.mrb[39].mxu1  ;;  %1110 = vmatpush1.bf16.msra.mxu1 %v1006_v8  ;;  %v956_v26 = vmax.f32 %v693_v42, 0.0  ;;  %v958_v29 = vmax.f32 %v766_v13, 0.0 }
 0x1e1   :  { %v699_v24 = vadd.f32 %v698_v22, %v2309_v7  ;;  %v772_v28 = vadd.f32 %v771_v25, %v2309_v7  ;;  %v957_v30 = vmax.f32 %v695_v14, 0.0  ;;  %v959_v33 = vmax.f32 %v768_v19, 0.0  ;;  %v2331_v8 = vpop.permute.xlu0 %607  ;;  %v2333_v42 = vpop.permute.xlu1 %612 }
 0x1e2   :  { %v964_v27 = vmax.f32 %v697_v20, 0.0  ;;  %v966_v0 = vmax.f32 %v770_v23, 0.0 }
 0x1e3   :  { %v965_v32 = vmax.f32 %v699_v24, 0.0  ;;  %v967_v36 = vmax.f32 %v772_v28, 0.0 }
 0x1e4   :  { %v1012_v34 = vpack.c.bf16 %v964_v27, %v956_v26  ;;  %v1014_v39 = vpack.c.bf16 %v966_v0, %v958_v29 }
 0x1e5   :  { %v1013_v4 = vpack.c.bf16 %v965_v32, %v957_v30  ;;  %v702_v43 = vpop.f32.mrb[40].mxu0  ;;  %v1015_v44 = vpack.c.bf16 %v967_v36, %v959_v33  ;;  %v775_v46 = vpop.f32.mrb[40].mxu1 }
 0x1e6   :  { %v703_v45 = vadd.f32 %v702_v43, %v2319_v41  ;;  %v704_v47 = vpop.f32.mrb[41].mxu0  ;;  %v776_v48 = vadd.f32 %v775_v46, %v2319_v41  ;;  %v777_v52 = vpop.f32.mrb[41].mxu1 }
 0x1e7   :  { %v705_v49 = vadd.f32 %v704_v47, %v2319_v41  ;;  %v706_v53 = vpop.f32.mrb[42].mxu0  ;;  %1038 = vmatprep.subr.bf16.mxu0 %v1013_v4  ;;  %v778_v54 = vadd.f32 %v777_v52, %v2319_v41  ;;  %v779_v56 = vpop.f32.mrb[42].mxu1  ;;  %1111 = vmatprep.subr.bf16.mxu1 %v1015_v44 }
 0x1e8   :  { %v707_v55 = vadd.f32 %v706_v53, %v2321_v5  ;;  %v708_v57 = vpop.f32.mrb[43].mxu0  ;;  %1039 = vmatpush1.bf16.msra.mxu0 %v1012_v34  ;;  %v780_v58 = vadd.f32 %v779_v56, %v2321_v5  ;;  %v781_v60 = vpop.f32.mrb[43].mxu1  ;;  %1112 = vmatpush1.bf16.msra.mxu1 %v1014_v39  ;;  %v972_v61 = vmax.f32 %v703_v45, 0.0  ;;  %v974_v40 = vmax.f32 %v776_v48, 0.0 }
 0x1e9   :  { %v709_v59 = vadd.f32 %v708_v57, %v2321_v5  ;;  %v782_v63 = vadd.f32 %v781_v60, %v2321_v5  ;;  %v973_v1 = vmax.f32 %v705_v49, 0.0  ;;  %v975_v9 = vmax.f32 %v778_v54, 0.0 }
 0x1ea   :  { %v980_v62 = vmax.f32 %v707_v55, 0.0  ;;  %v982_v2 = vmax.f32 %v780_v58, 0.0 }
 0x1eb   :  { %v981_v3 = vmax.f32 %v709_v59, 0.0  ;;  %v983_v10 = vmax.f32 %v782_v63, 0.0 }
 0x1ec   :  { %v1020_v35 = vpack.c.bf16 %v980_v62, %v972_v61  ;;  %v1022_v11 = vpack.c.bf16 %v982_v2, %v974_v40 }
 0x1ed   :  { %v1021_v12 = vpack.c.bf16 %v981_v3, %v973_v1  ;;  %v712_v13 = vpop.f32.mrb[44].mxu0  ;;  %v1023_v14 = vpack.c.bf16 %v983_v10, %v975_v9  ;;  %v785_v17 = vpop.f32.mrb[44].mxu1 }
 0x1ee   :  { %v713_v15 = vadd.f32 %v712_v13, %v2331_v8  ;;  %v714_v19 = vpop.f32.mrb[45].mxu0  ;;  %v786_v20 = vadd.f32 %v785_v17, %v2331_v8  ;;  %v787_v22 = vpop.f32.mrb[45].mxu1 }
 0x1ef   :  { %v715_v21 = vadd.f32 %v714_v19, %v2331_v8  ;;  %v716_v23 = vpop.f32.mrb[46].mxu0  ;;  %1040 = vmatprep.subr.bf16.mxu0 %v1021_v12  ;;  %v788_v24 = vadd.f32 %v787_v22, %v2331_v8  ;;  %v789_v26 = vpop.f32.mrb[46].mxu1  ;;  %1113 = vmatprep.subr.bf16.mxu1 %v1023_v14 }
 0x1f0   :  { %v717_v25 = vadd.f32 %v716_v23, %v2333_v42  ;;  %v718_v27 = vpop.f32.mrb[47].mxu0  ;;  %1041 = vmatpush1.bf16.msra.mxu0 %v1020_v35  ;;  %v790_v28 = vadd.f32 %v789_v26, %v2333_v42  ;;  %v791_v30 = vpop.f32.mrb[47].mxu1  ;;  %1114 = vmatpush1.bf16.msra.mxu1 %v1022_v11  ;;  %v988_v0 = vmax.f32 %v713_v15, 0.0  ;;  %v990_v34 = vmax.f32 %v786_v20, 0.0 }
 0x1f1   :  { %v719_v29 = vadd.f32 %v718_v27, %v2333_v42  ;;  %v792_v33 = vadd.f32 %v791_v30, %v2333_v42  ;;  %v989_v36 = vmax.f32 %v715_v21, 0.0  ;;  %v991_v43 = vmax.f32 %v788_v24, 0.0 }
 0x1f2   :  { %v996_v32 = vmax.f32 %v717_v25, 0.0  ;;  %v998_v39 = vmax.f32 %v790_v28, 0.0 }
 0x1f3   :  { %v997_v4 = vmax.f32 %v719_v29, 0.0  ;;  %v999_v45 = vmax.f32 %v792_v33, 0.0 }
 0x1f4   :  { %v1028_v44 = vpack.c.bf16 %v996_v32, %v988_v0  ;;  %v1030_v46 = vpack.c.bf16 %v998_v39, %v990_v34 }
 0x1f5   :  { %v1029_v47 = vpack.c.bf16 %v997_v4, %v989_v36  ;;  %v828_v48 = vpop.f32.mrb[48].mxu0  ;;  %v1031_v49 = vpack.c.bf16 %v999_v45, %v991_v43  ;;  %v901_v53 = vpop.f32.mrb[48].mxu1 }
 0x1f6   :  { %v829_v52 = vadd.f32 %v828_v48, %v2295_v37  ;;  %v830_v54 = vpop.f32.mrb[49].mxu0  ;;  %v902_v55 = vadd.f32 %v901_v53, %v2295_v37  ;;  %v903_v57 = vpop.f32.mrb[49].mxu1 }
 0x1f7   :  { %v831_v56 = vadd.f32 %v830_v54, %v2295_v37  ;;  %v832_v58 = vpop.f32.mrb[50].mxu0  ;;  %1042 = vmatprep.subr.bf16.mxu0 %v1029_v47  ;;  %v904_v59 = vadd.f32 %v903_v57, %v2295_v37  ;;  %v905_v61 = vpop.f32.mrb[50].mxu1  ;;  %1115 = vmatprep.subr.bf16.mxu1 %v1031_v49 }
 0x1f8   :  { %v833_v60 = vadd.f32 %v832_v58, %v2297_v38  ;;  %v834_v62 = vpop.f32.mrb[51].mxu0  ;;  %1043 = vmatpush1.bf16.msra.mxu0 %v1028_v44  ;;  %v906_v63 = vadd.f32 %v905_v61, %v2297_v38  ;;  %v907_v1 = vpop.f32.mrb[51].mxu1  ;;  %1116 = vmatpush1.bf16.msra.mxu1 %v1030_v46  ;;  %v944_v2 = vmax.f32 %v829_v52, 0.0  ;;  %v946_v35 = vmax.f32 %v902_v55, 0.0 }
 0x1f9   :  { %v835_v40 = vadd.f32 %v834_v62, %v2297_v38  ;;  %v908_v9 = vadd.f32 %v907_v1, %v2297_v38  ;;  %v945_v10 = vmax.f32 %v831_v56, 0.0  ;;  %v947_v13 = vmax.f32 %v904_v59, 0.0 }
 0x1fa   :  { %v952_v3 = vmax.f32 %v833_v60, 0.0  ;;  %v954_v11 = vmax.f32 %v906_v63, 0.0 }
 0x1fb   :  { %v953_v12 = vmax.f32 %v835_v40, 0.0  ;;  %1898 = vmatmul.mubr.msk.bf16.vlgmr.msra.gmra.mrb[64].mxu0 %vm635_vm1, %v2201_v51  ;;  %v955_v15 = vmax.f32 %v908_v9, 0.0  ;;  %1902 = vmatmul.mubr.msk.bf16.vlgmr.msra.gmra.mrb[64].mxu1 %vm635_vm1, %v2201_v51 }
 0x1fc   :  { %v1008_v14 = vpack.c.bf16 %v952_v3, %v944_v2  ;;  %1078 = vmatprep.mubr.bf16.mxu0 %v1960_v6  ;;  %v1010_v17 = vpack.c.bf16 %v954_v11, %v946_v35  ;;  %1151 = vmatprep.mubr.bf16.mxu1 %v1960_v6 }
 0x1fd   :  { %v1009_v19 = vpack.c.bf16 %v953_v12, %v945_v10  ;;  %v838_v20 = vpop.f32.mrb[52].mxu0  ;;  %v1011_v21 = vpack.c.bf16 %v955_v15, %v947_v13  ;;  %v911_v23 = vpop.f32.mrb[52].mxu1 }
 0x1fe   :  { %v839_v22 = vadd.f32 %v838_v20, %v2307_v31  ;;  %v840_v24 = vpop.f32.mrb[53].mxu0  ;;  %v912_v25 = vadd.f32 %v911_v23, %v2307_v31  ;;  %v913_v27 = vpop.f32.mrb[53].mxu1 }
 0x1ff   :  { %v841_v26 = vadd.f32 %v840_v24, %v2307_v31  ;;  %v842_v28 = vpop.f32.mrb[54].mxu0  ;;  %1182 = vmatprep.subr.bf16.mxu0 %v1009_v19  ;;  %v914_v29 = vadd.f32 %v913_v27, %v2307_v31  ;;  %v915_v0 = vpop.f32.mrb[54].mxu1  ;;  %1255 = vmatprep.subr.bf16.mxu1 %v1011_v21 }
 0x200   :  { %v843_v30 = vadd.f32 %v842_v28, %v2309_v7  ;;  %v844_v32 = vpop.f32.mrb[55].mxu0  ;;  %1183 = vmatpush1.bf16.msra.mxu0 %v1008_v14  ;;  %v916_v33 = vadd.f32 %v915_v0, %v2309_v7  ;;  %v917_v36 = vpop.f32.mrb[55].mxu1  ;;  %1256 = vmatpush1.bf16.msra.mxu1 %v1010_v17  ;;  %v960_v39 = vmax.f32 %v839_v22, 0.0  ;;  %v962_v44 = vmax.f32 %v912_v25, 0.0 }
 0x201   :  { %v845_v34 = vadd.f32 %v844_v32, %v2309_v7  ;;  %v918_v43 = vadd.f32 %v917_v36, %v2309_v7  ;;  %v961_v45 = vmax.f32 %v841_v26, 0.0  ;;  %v963_v48 = vmax.f32 %v914_v29, 0.0 }
 0x202   :  { %v968_v4 = vmax.f32 %v843_v30, 0.0  ;;  %v970_v46 = vmax.f32 %v916_v33, 0.0 }
 0x203   :  { %v969_v47 = vmax.f32 %v845_v34, 0.0  ;;  %1899 = vmatmul.mubr.msk.bf16.gmra.mrb[68].mxu0 %vm635_vm1, %v2220_v18  ;;  %v971_v52 = vmax.f32 %v918_v43, 0.0  ;;  %1903 = vmatmul.mubr.msk.bf16.gmra.mrb[68].mxu1 %vm635_vm1, %v2220_v18 }
 0x204   :  { %v1016_v49 = vpack.c.bf16 %v968_v4, %v960_v39  ;;  %1088 = vmatprep.mubr.bf16.mxu0 %v1960_v6  ;;  %v1018_v53 = vpack.c.bf16 %v970_v46, %v962_v44  ;;  %1161 = vmatprep.mubr.bf16.mxu1 %v1960_v6 }
 0x205   :  { %v1017_v54 = vpack.c.bf16 %v969_v47, %v961_v45  ;;  %v848_v55 = vpop.f32.mrb[56].mxu0  ;;  %v1019_v56 = vpack.c.bf16 %v971_v52, %v963_v48  ;;  %v921_v58 = vpop.f32.mrb[56].mxu1 }
 0x206   :  { %v849_v57 = vadd.f32 %v848_v55, %v2319_v41  ;;  %v850_v59 = vpop.f32.mrb[57].mxu0  ;;  %v922_v60 = vadd.f32 %v921_v58, %v2319_v41  ;;  %v923_v62 = vpop.f32.mrb[57].mxu1 }
 0x207   :  { %v851_v61 = vadd.f32 %v850_v59, %v2319_v41  ;;  %v852_v63 = vpop.f32.mrb[58].mxu0  ;;  %1184 = vmatprep.subr.bf16.mxu0 %v1017_v54  ;;  %v924_v40 = vadd.f32 %v923_v62, %v2319_v41  ;;  %v925_v2 = vpop.f32.mrb[58].mxu1  ;;  %1257 = vmatprep.subr.bf16.mxu1 %v1019_v56 }
 0x208   :  { %v853_v1 = vadd.f32 %v852_v63, %v2321_v5  ;;  %v854_v3 = vpop.f32.mrb[59].mxu0  ;;  %1185 = vmatpush1.bf16.msra.mxu0 %v1016_v49  ;;  %v926_v9 = vadd.f32 %v925_v2, %v2321_v5  ;;  %v927_v10 = vpop.f32.mrb[59].mxu1  ;;  %1258 = vmatpush1.bf16.msra.mxu1 %v1018_v53  ;;  %v976_v11 = vmax.f32 %v849_v57, 0.0  ;;  %v978_v14 = vmax.f32 %v922_v60, 0.0 }
 0x209   :  { %v855_v35 = vadd.f32 %v854_v3, %v2321_v5  ;;  %v928_v13 = vadd.f32 %v927_v10, %v2321_v5  ;;  %v977_v15 = vmax.f32 %v851_v61, 0.0  ;;  %v979_v20 = vmax.f32 %v924_v40, 0.0 }
 0x20a   :  { %v984_v12 = vmax.f32 %v853_v1, 0.0  ;;  %v986_v17 = vmax.f32 %v926_v9, 0.0 }
 0x20b   :  { %v985_v19 = vmax.f32 %v855_v35, 0.0  ;;  %1900 = vmatmul.mubr.msk.bf16.gmra.mrb[72].mxu0 %vm635_vm1, %v2239_v50  ;;  %v987_v22 = vmax.f32 %v928_v13, 0.0  ;;  %1904 = vmatmul.mubr.msk.bf16.gmra.mrb[72].mxu1 %vm635_vm1, %v2239_v50 }
 0x20c   :  { %v1024_v21 = vpack.c.bf16 %v984_v12, %v976_v11  ;;  %1098 = vmatprep.mubr.bf16.mxu0 %v1960_v6  ;;  %v1026_v23 = vpack.c.bf16 %v986_v17, %v978_v14  ;;  %1171 = vmatprep.mubr.bf16.mxu1 %v1960_v6 }
 0x20d   :  { %v1025_v24 = vpack.c.bf16 %v985_v19, %v977_v15  ;;  %v858_v25 = vpop.f32.mrb[60].mxu0  ;;  %v1027_v26 = vpack.c.bf16 %v987_v22, %v979_v20  ;;  %v931_v28 = vpop.f32.mrb[60].mxu1 }
 0x20e   :  { %v859_v27 = vadd.f32 %v858_v25, %v2331_v8  ;;  %v860_v29 = vpop.f32.mrb[61].mxu0  ;;  %v932_v30 = vadd.f32 %v931_v28, %v2331_v8  ;;  %v933_v32 = vpop.f32.mrb[61].mxu1 }
 0x20f   :  { %v861_v0 = vadd.f32 %v860_v29, %v2331_v8  ;;  %v862_v33 = vpop.f32.mrb[62].mxu0  ;;  %1186 = vmatprep.subr.bf16.mxu0 %v1025_v24  ;;  %v934_v34 = vadd.f32 %v933_v32, %v2331_v8  ;;  %v935_v39 = vpop.f32.mrb[62].mxu1  ;;  %1259 = vmatprep.subr.bf16.mxu1 %v1027_v26 }
 0x210   :  { %v863_v36 = vadd.f32 %v862_v33, %v2333_v42  ;;  %v864_v4 = vpop.f32.mrb[63].mxu0  ;;  %1187 = vmatpush1.bf16.msra.mxu0 %v1024_v21  ;;  %v936_v43 = vadd.f32 %v935_v39, %v2333_v42  ;;  %v937_v45 = vpop.f32.mrb[63].mxu1  ;;  %1260 = vmatpush1.bf16.msra.mxu1 %v1026_v23  ;;  %v992_v46 = vmax.f32 %v859_v27, 0.0  ;;  %v994_v49 = vmax.f32 %v932_v30, 0.0 }
 0x211   :  { %v865_v44 = vadd.f32 %v864_v4, %v2333_v42  ;;  %v938_v48 = vadd.f32 %v937_v45, %v2333_v42  ;;  %v993_v52 = vmax.f32 %v861_v0, 0.0  ;;  %v995_v55 = vmax.f32 %v934_v34, 0.0 }
 0x212   :  { %v1000_v47 = vmax.f32 %v863_v36, 0.0  ;;  %v1002_v53 = vmax.f32 %v936_v43, 0.0 }
 0x213   :  { %v1001_v54 = vmax.f32 %v865_v44, 0.0  ;;  %1901 = vmatmul.mubr.msk.bf16.gmra.mrb[76].mxu0 %vm635_vm1, %v2258_v16  ;;  %v1003_v57 = vmax.f32 %v938_v48, 0.0  ;;  %1905 = vmatmul.mubr.msk.bf16.gmra.mrb[76].mxu1 %vm635_vm1, %v2258_v16 }
 0x214   :  { %v1032_v56 = vpack.c.bf16 %v1000_v47, %v992_v46  ;;  %1214 = vmatprep.mubr.bf16.mxu0 %v1960_v6  ;;  %v1034_v58 = vpack.c.bf16 %v1002_v53, %v994_v49  ;;  %1287 = vmatprep.mubr.bf16.mxu1 %v1960_v6 }
 0x215   :  { %v1033_v59 = vpack.c.bf16 %v1001_v54, %v993_v52  ;;  %v1035_v60 = vpack.c.bf16 %v1003_v57, %v995_v55 }
 0x217   :  { %1188 = vmatprep.subr.bf16.mxu0 %v1033_v59  ;;  %1261 = vmatprep.subr.bf16.mxu1 %v1035_v60 }
 0x218   :  { %1189 = vmatpush1.bf16.msra.mxu0 %v1032_v56  ;;  %1262 = vmatpush1.bf16.msra.mxu1 %v1034_v58 }
 0x21b   :  { %1906 = vmatmul.mubr.msk.bf16.vlgmr.msra.gmra.mrb[80].mxu0 %vm635_vm1, %v2201_v51  ;;  %1910 = vmatmul.mubr.msk.bf16.vlgmr.msra.gmra.mrb[80].mxu1 %vm635_vm1, %v2201_v51 }
 0x21c   :  { %1224 = vmatprep.mubr.bf16.mxu0 %v1960_v6  ;;  %1297 = vmatprep.mubr.bf16.mxu1 %v1960_v6 }
 0x223   :  { %1907 = vmatmul.mubr.msk.bf16.gmra.mrb[84].mxu0 %vm635_vm1, %v2220_v18  ;;  %1911 = vmatmul.mubr.msk.bf16.gmra.mrb[84].mxu1 %vm635_vm1, %v2220_v18 }
 0x224   :  { %1234 = vmatprep.mubr.bf16.mxu0 %v1960_v6  ;;  %1307 = vmatprep.mubr.bf16.mxu1 %v1960_v6 }
 0x22b   :  { %1908 = vmatmul.mubr.msk.bf16.gmra.mrb[88].mxu0 %vm635_vm1, %v2239_v50  ;;  %1912 = vmatmul.mubr.msk.bf16.gmra.mrb[88].mxu1 %vm635_vm1, %v2239_v50 }
 0x22c   :  { %1244 = vmatprep.mubr.bf16.mxu0 %v1960_v6  ;;  %1317 = vmatprep.mubr.bf16.mxu1 %v1960_v6 }
 0x233   :  { %1909 = vmatmul.mubr.msk.bf16.gmra.mrb[92].mxu0 %vm635_vm1, %v2258_v16  ;;  %1913 = vmatmul.mubr.msk.bf16.gmra.mrb[92].mxu1 %vm635_vm1, %v2258_v16 }
 0x234   :  { %1478 = vmatprep.mubr.bf16.mxu0 %v1960_v6  ;;  %1521 = vmatprep.mubr.bf16.mxu1 %v1960_v6 }
 0x2ce   :  { %v1070_v51 = vpop.f32.mrb[64].mxu0  ;;  %v1143_v61 = vpop.f32.mrb[64].mxu1 }
 0x2cf   :  { %v1071_v18 = vadd.f32 %v1070_v51, %v2295_v37  ;;  %v1072_v62 = vpop.f32.mrb[65].mxu0  ;;  %v1144_v50 = vadd.f32 %v1143_v61, %v2295_v37  ;;  %v1145_v40 = vpop.f32.mrb[65].mxu1 }
 0x2d0   :  { %v1073_v63 = vadd.f32 %v1072_v62, %v2295_v37  ;;  %v1074_v1 = vpop.f32.mrb[66].mxu0  ;;  %v1146_v2 = vadd.f32 %v1145_v40, %v2295_v37  ;;  %v1147_v16 = vpop.f32.mrb[66].mxu1 }
 0x2d1   :  { %v1075_v3 = vadd.f32 %v1074_v1, %v2297_v38  ;;  %v1076_v9 = vpop.f32.mrb[67].mxu0  ;;  %v1148_v35 = vadd.f32 %v1147_v16, %v2297_v38  ;;  %v1149_v11 = vpop.f32.mrb[67].mxu1  ;;  %v1328_v12 = vmax.f32 %v1071_v18, 0.0  ;;  %v1330_v15 = vmax.f32 %v1144_v50, 0.0 }
 0x2d2   :  { %v1077_v10 = vadd.f32 %v1076_v9, %v2297_v38  ;;  %v1150_v14 = vadd.f32 %v1149_v11, %v2297_v38  ;;  %v1329_v17 = vmax.f32 %v1073_v63, 0.0  ;;  %v1331_v21 = vmax.f32 %v1146_v2, 0.0 }
 0x2d3   :  { %v1336_v13 = vmax.f32 %v1075_v3, 0.0  ;;  %v1338_v19 = vmax.f32 %v1148_v35, 0.0 }
 0x2d4   :  { %v1337_v20 = vmax.f32 %v1077_v10, 0.0  ;;  %v1339_v23 = vmax.f32 %v1150_v14, 0.0 }
 0x2d5   :  { %v1392_v22 = vpack.c.bf16 %v1336_v13, %v1328_v12  ;;  %v1394_v24 = vpack.c.bf16 %v1338_v19, %v1330_v15 }
 0x2d6   :  { %v1393_v25 = vpack.c.bf16 %v1337_v20, %v1329_v17  ;;  %v1080_v26 = vpop.f32.mrb[68].mxu0  ;;  %v1395_v27 = vpack.c.bf16 %v1339_v23, %v1331_v21  ;;  %v1153_v29 = vpop.f32.mrb[68].mxu1 }
 0x2d7   :  { %v1081_v28 = vadd.f32 %v1080_v26, %v2307_v31  ;;  %v1082_v30 = vpop.f32.mrb[69].mxu0  ;;  %v1154_v0 = vadd.f32 %v1153_v29, %v2307_v31  ;;  %v1155_v33 = vpop.f32.mrb[69].mxu1 }
 0x2d8   :  { %v1083_v32 = vadd.f32 %v1082_v30, %v2307_v31  ;;  %v1084_v34 = vpop.f32.mrb[70].mxu0  ;;  %1446 = vmatprep.subr.bf16.mxu0 %v1393_v25  ;;  %v1156_v36 = vadd.f32 %v1155_v33, %v2307_v31  ;;  %v1157_v4 = vpop.f32.mrb[70].mxu1  ;;  %1489 = vmatprep.subr.bf16.mxu1 %v1395_v27 }
 0x2d9   :  { %v1085_v39 = vadd.f32 %v1084_v34, %v2309_v7  ;;  %v1086_v43 = vpop.f32.mrb[71].mxu0  ;;  %1447 = vmatpush1.bf16.msra.mxu0 %v1392_v22  ;;  %v1158_v44 = vadd.f32 %v1157_v4, %v2309_v7  ;;  %v1159_v46 = vpop.f32.mrb[71].mxu1  ;;  %1490 = vmatpush1.bf16.msra.mxu1 %v1394_v24  ;;  %v1344_v47 = vmax.f32 %v1081_v28, 0.0  ;;  %v1346_v52 = vmax.f32 %v1154_v0, 0.0 }
 0x2da   :  { %v1087_v45 = vadd.f32 %v1086_v43, %v2309_v7  ;;  %v1160_v49 = vadd.f32 %v1159_v46, %v2309_v7  ;;  %v1345_v53 = vmax.f32 %v1083_v32, 0.0  ;;  %v1347_v56 = vmax.f32 %v1156_v36, 0.0 }
 0x2db   :  { %v1352_v48 = vmax.f32 %v1085_v39, 0.0  ;;  %v1354_v54 = vmax.f32 %v1158_v44, 0.0 }
 0x2dc   :  { %v1353_v55 = vmax.f32 %v1087_v45, 0.0  ;;  %v1355_v58 = vmax.f32 %v1160_v49, 0.0 }
 0x2dd   :  { %v1400_v57 = vpack.c.bf16 %v1352_v48, %v1344_v47  ;;  %v1402_v59 = vpack.c.bf16 %v1354_v54, %v1346_v52 }
 0x2de   :  { %v1401_v60 = vpack.c.bf16 %v1353_v55, %v1345_v53  ;;  %v1090_v51 = vpop.f32.mrb[72].mxu0  ;;  %v1403_v18 = vpack.c.bf16 %v1355_v58, %v1347_v56  ;;  %v1163_v62 = vpop.f32.mrb[72].mxu1 }
 0x2df   :  { %v1091_v61 = vadd.f32 %v1090_v51, %v2319_v41  ;;  %v1092_v50 = vpop.f32.mrb[73].mxu0  ;;  %v1164_v63 = vadd.f32 %v1163_v62, %v2319_v41  ;;  %v1165_v1 = vpop.f32.mrb[73].mxu1 }
 0x2e0   :  { %v1093_v40 = vadd.f32 %v1092_v50, %v2319_v41  ;;  %v1094_v2 = vpop.f32.mrb[74].mxu0  ;;  %1448 = vmatprep.subr.bf16.mxu0 %v1401_v60  ;;  %v1166_v3 = vadd.f32 %v1165_v1, %v2319_v41  ;;  %v1167_v9 = vpop.f32.mrb[74].mxu1  ;;  %1491 = vmatprep.subr.bf16.mxu1 %v1403_v18 }
 0x2e1   :  { %v1095_v16 = vadd.f32 %v1094_v2, %v2321_v5  ;;  %v1096_v35 = vpop.f32.mrb[75].mxu0  ;;  %1449 = vmatpush1.bf16.msra.mxu0 %v1400_v57  ;;  %v1168_v10 = vadd.f32 %v1167_v9, %v2321_v5  ;;  %v1169_v12 = vpop.f32.mrb[75].mxu1  ;;  %1492 = vmatpush1.bf16.msra.mxu1 %v1402_v59  ;;  %v1360_v13 = vmax.f32 %v1091_v61, 0.0  ;;  %v1362_v17 = vmax.f32 %v1164_v63, 0.0 }
 0x2e2   :  { %v1097_v11 = vadd.f32 %v1096_v35, %v2321_v5  ;;  %v1170_v15 = vadd.f32 %v1169_v12, %v2321_v5  ;;  %v1361_v19 = vmax.f32 %v1093_v40, 0.0  ;;  %v1363_v22 = vmax.f32 %v1166_v3, 0.0 }
 0x2e3   :  { %v1368_v14 = vmax.f32 %v1095_v16, 0.0  ;;  %v1370_v20 = vmax.f32 %v1168_v10, 0.0  ;;  %v2461_v16 = vld [vmem:[%s2530_s5] sm:$0xff]  }
 0x2e4   :  { %v1369_v21 = vmax.f32 %v1097_v11, 0.0  ;;  %v1371_v24 = vmax.f32 %v1170_v15, 0.0 }
 0x2e5   :  { %v1408_v23 = vpack.c.bf16 %v1368_v14, %v1360_v13  ;;  %v1410_v25 = vpack.c.bf16 %v1370_v20, %v1362_v17 }
 0x2e6   :  { %v1409_v26 = vpack.c.bf16 %v1369_v21, %v1361_v19  ;;  %v1100_v27 = vpop.f32.mrb[76].mxu0  ;;  %v1411_v28 = vpack.c.bf16 %v1371_v24, %v1363_v22  ;;  %v1173_v30 = vpop.f32.mrb[76].mxu1 }
 0x2e7   :  { %v1101_v29 = vadd.f32 %v1100_v27, %v2331_v8  ;;  %v1102_v0 = vpop.f32.mrb[77].mxu0  ;;  %v1174_v32 = vadd.f32 %v1173_v30, %v2331_v8  ;;  %v1175_v34 = vpop.f32.mrb[77].mxu1 }
 0x2e8   :  { %v1103_v33 = vadd.f32 %v1102_v0, %v2331_v8  ;;  %v1104_v36 = vpop.f32.mrb[78].mxu0  ;;  %1450 = vmatprep.subr.bf16.mxu0 %v1409_v26  ;;  %v1176_v39 = vadd.f32 %v1175_v34, %v2331_v8  ;;  %v1177_v43 = vpop.f32.mrb[78].mxu1  ;;  %1493 = vmatprep.subr.bf16.mxu1 %v1411_v28 }
 0x2e9   :  { %v1105_v4 = vadd.f32 %v1104_v36, %v2333_v42  ;;  %v1106_v44 = vpop.f32.mrb[79].mxu0  ;;  %1451 = vmatpush1.bf16.msra.mxu0 %v1408_v23  ;;  %v1178_v45 = vadd.f32 %v1177_v43, %v2333_v42  ;;  %v1179_v47 = vpop.f32.mrb[79].mxu1  ;;  %1494 = vmatpush1.bf16.msra.mxu1 %v1410_v25  ;;  %v1376_v48 = vmax.f32 %v1101_v29, 0.0  ;;  %v1378_v53 = vmax.f32 %v1174_v32, 0.0 }
 0x2ea   :  { %v1107_v46 = vadd.f32 %v1106_v44, %v2333_v42  ;;  %v1180_v52 = vadd.f32 %v1179_v47, %v2333_v42  ;;  %v1377_v54 = vmax.f32 %v1103_v33, 0.0  ;;  %v1379_v57 = vmax.f32 %v1176_v39, 0.0 }
 0x2eb   :  { %v1384_v49 = vmax.f32 %v1105_v4, 0.0  ;;  %v1386_v55 = vmax.f32 %v1178_v45, 0.0 }
 0x2ec   :  { %v1385_v56 = vmax.f32 %v1107_v46, 0.0  ;;  %v1387_v59 = vmax.f32 %v1180_v52, 0.0 }
 0x2ed   :  { %v1416_v58 = vpack.c.bf16 %v1384_v49, %v1376_v48  ;;  %v1418_v60 = vpack.c.bf16 %v1386_v55, %v1378_v53 }
 0x2ee   :  { %v1417_v51 = vpack.c.bf16 %v1385_v56, %v1377_v54  ;;  %v1216_v18 = vpop.f32.mrb[80].mxu0  ;;  %v1419_v61 = vpack.c.bf16 %v1387_v59, %v1379_v57  ;;  %v1289_v50 = vpop.f32.mrb[80].mxu1 }
 0x2ef   :  { %v1217_v62 = vadd.f32 %v1216_v18, %v2295_v37  ;;  %v1218_v63 = vpop.f32.mrb[81].mxu0  ;;  %v1290_v40 = vadd.f32 %v1289_v50, %v2295_v37  ;;  %v1291_v2 = vpop.f32.mrb[81].mxu1 }
 0x2f0   :  { %v1219_v1 = vadd.f32 %v1218_v63, %v2295_v37  ;;  %v1220_v3 = vpop.f32.mrb[82].mxu0  ;;  %1452 = vmatprep.subr.bf16.mxu0 %v1417_v51  ;;  %v1292_v9 = vadd.f32 %v1291_v2, %v2295_v37  ;;  %v1293_v10 = vpop.f32.mrb[82].mxu1  ;;  %1495 = vmatprep.subr.bf16.mxu1 %v1419_v61 }
 0x2f1   :  { %v1221_v35 = vadd.f32 %v1220_v3, %v2297_v38  ;;  %v1222_v11 = vpop.f32.mrb[83].mxu0  ;;  %1453 = vmatpush1.bf16.msra.mxu0 %v1416_v58  ;;  %v1294_v12 = vadd.f32 %v1293_v10, %v2297_v38  ;;  %v1295_v14 = vpop.f32.mrb[83].mxu1  ;;  %1496 = vmatpush1.bf16.msra.mxu1 %v1418_v60  ;;  %v1332_v15 = vmax.f32 %v1217_v62, 0.0  ;;  %v1334_v20 = vmax.f32 %v1290_v40, 0.0 }
 0x2f2   :  { %v1223_v13 = vadd.f32 %v1222_v11, %v2297_v38  ;;  %v1296_v19 = vadd.f32 %v1295_v14, %v2297_v38  ;;  %v1333_v21 = vmax.f32 %v1219_v1, 0.0  ;;  %v1335_v23 = vmax.f32 %v1292_v9, 0.0 }
 0x2f3   :  { %v1340_v17 = vmax.f32 %v1221_v35, 0.0  ;;  %v1342_v22 = vmax.f32 %v1294_v12, 0.0 }
 0x2f4   :  { %v1341_v37 = vmax.f32 %v1223_v13, 0.0  ;;  %1915 = vmatmul.mubr.msk.bf16.vlgmr.msra.gmra.mrb[96].mxu0 %vm635_vm1, %v2461_v16  ;;  %v1343_v25 = vmax.f32 %v1296_v19, 0.0  ;;  %1916 = vmatmul.mubr.msk.bf16.vlgmr.msra.gmra.mrb[96].mxu1 %vm635_vm1, %v2461_v16 }
 0x2f5   :  { %v1396_v24 = vpack.c.bf16 %v1340_v17, %v1332_v15  ;;  %1564 = vmatprep.mubr.bf16.mxu0 %v1960_v6  ;;  %v1398_v26 = vpack.c.bf16 %v1342_v22, %v1334_v20  ;;  %1607 = vmatprep.mubr.bf16.mxu1 %v1960_v6 }
 0x2f6   :  { %v1397_v27 = vpack.c.bf16 %v1341_v37, %v1333_v21  ;;  %v1226_v28 = vpop.f32.mrb[84].mxu0  ;;  %v1399_v38 = vpack.c.bf16 %v1343_v25, %v1335_v23  ;;  %v1299_v30 = vpop.f32.mrb[84].mxu1 }
 0x2f7   :  { %v1227_v29 = vadd.f32 %v1226_v28, %v2307_v31  ;;  %v1228_v0 = vpop.f32.mrb[85].mxu0  ;;  %v1300_v32 = vadd.f32 %v1299_v30, %v2307_v31  ;;  %v1301_v34 = vpop.f32.mrb[85].mxu1 }
 0x2f8   :  { %v1229_v33 = vadd.f32 %v1228_v0, %v2307_v31  ;;  %v1230_v36 = vpop.f32.mrb[86].mxu0  ;;  %1532 = vmatprep.subr.bf16.mxu0 %v1397_v27  ;;  %v1302_v39 = vadd.f32 %v1301_v34, %v2307_v31  ;;  %v1303_v43 = vpop.f32.mrb[86].mxu1  ;;  %1575 = vmatprep.subr.bf16.mxu1 %v1399_v38 }
 0x2f9   :  { %v1231_v4 = vadd.f32 %v1230_v36, %v2309_v7  ;;  %v1232_v44 = vpop.f32.mrb[87].mxu0  ;;  %1533 = vmatpush1.bf16.msra.mxu0 %v1396_v24  ;;  %v1304_v45 = vadd.f32 %v1303_v43, %v2309_v7  ;;  %v1305_v47 = vpop.f32.mrb[87].mxu1  ;;  %1576 = vmatpush1.bf16.msra.mxu1 %v1398_v26  ;;  %v1348_v48 = vmax.f32 %v1227_v29, 0.0  ;;  %v1350_v53 = vmax.f32 %v1300_v32, 0.0 }
 0x2fa   :  { %v1233_v46 = vadd.f32 %v1232_v44, %v2309_v7  ;;  %v1306_v52 = vadd.f32 %v1305_v47, %v2309_v7  ;;  %v1349_v54 = vmax.f32 %v1229_v33, 0.0  ;;  %v1351_v56 = vmax.f32 %v1302_v39, 0.0 }
 0x2fb   :  { %v1356_v49 = vmax.f32 %v1231_v4, 0.0  ;;  %v1358_v55 = vmax.f32 %v1304_v45, 0.0 }
 0x2fc   :  { %v1357_v31 = vmax.f32 %v1233_v46, 0.0  ;;  %v1359_v58 = vmax.f32 %v1306_v52, 0.0 }
 0x2fd   :  { %v1404_v57 = vpack.c.bf16 %v1356_v49, %v1348_v48  ;;  %v1406_v59 = vpack.c.bf16 %v1358_v55, %v1350_v53 }
 0x2fe   :  { %v1405_v60 = vpack.c.bf16 %v1357_v31, %v1349_v54  ;;  %v1236_v51 = vpop.f32.mrb[88].mxu0  ;;  %v1407_v18 = vpack.c.bf16 %v1359_v58, %v1351_v56  ;;  %v1309_v62 = vpop.f32.mrb[88].mxu1 }
 0x2ff   :  { %v1237_v61 = vadd.f32 %v1236_v51, %v2319_v41  ;;  %v1238_v50 = vpop.f32.mrb[89].mxu0  ;;  %v1310_v63 = vadd.f32 %v1309_v62, %v2319_v41  ;;  %v1311_v7 = vpop.f32.mrb[89].mxu1 }
 0x300   :  { %v1239_v40 = vadd.f32 %v1238_v50, %v2319_v41  ;;  %v1240_v1 = vpop.f32.mrb[90].mxu0  ;;  %1534 = vmatprep.subr.bf16.mxu0 %v1405_v60  ;;  %v1312_v2 = vadd.f32 %v1311_v7, %v2319_v41  ;;  %v1313_v9 = vpop.f32.mrb[90].mxu1  ;;  %1577 = vmatprep.subr.bf16.mxu1 %v1407_v18 }
 0x301   :  { %v1241_v3 = vadd.f32 %v1240_v1, %v2321_v5  ;;  %v1242_v35 = vpop.f32.mrb[91].mxu0  ;;  %1535 = vmatpush1.bf16.msra.mxu0 %v1404_v57  ;;  %v1314_v10 = vadd.f32 %v1313_v9, %v2321_v5  ;;  %v1315_v12 = vpop.f32.mrb[91].mxu1  ;;  %1578 = vmatpush1.bf16.msra.mxu1 %v1406_v59  ;;  %v1364_v13 = vmax.f32 %v1237_v61, 0.0  ;;  %v1366_v17 = vmax.f32 %v1310_v63, 0.0 }
 0x302   :  { %v1243_v11 = vadd.f32 %v1242_v35, %v2321_v5  ;;  %v1316_v15 = vadd.f32 %v1315_v12, %v2321_v5  ;;  %v1365_v19 = vmax.f32 %v1239_v40, 0.0  ;;  %v1367_v21 = vmax.f32 %v1312_v2, 0.0  ;;  %v1436_v57 = vpop.permute.xlu1 %1435 }
 0x303   :  { %v1372_v14 = vmax.f32 %v1241_v3, 0.0  ;;  %v1374_v20 = vmax.f32 %v1314_v10, 0.0 }
 0x304   :  { %v1373_v41 = vmax.f32 %v1243_v11, 0.0  ;;  %v1375_v37 = vmax.f32 %v1316_v15, 0.0 }
 0x305   :  { %v1412_v22 = vpack.c.bf16 %v1372_v14, %v1364_v13  ;;  %v1414_v23 = vpack.c.bf16 %v1374_v20, %v1366_v17 }
 0x306   :  { %v1413_v24 = vpack.c.bf16 %v1373_v41, %v1365_v19  ;;  %v1246_v25 = vpop.f32.mrb[92].mxu0  ;;  %v1415_v26 = vpack.c.bf16 %v1375_v37, %v1367_v21  ;;  %v1319_v28 = vpop.f32.mrb[92].mxu1 }
 0x307   :  { %v1247_v27 = vadd.f32 %v1246_v25, %v2331_v8  ;;  %v1248_v38 = vpop.f32.mrb[93].mxu0  ;;  %v1320_v29 = vadd.f32 %v1319_v28, %v2331_v8  ;;  %v1321_v5 = vpop.f32.mrb[93].mxu1 }
 0x308   :  { %v1249_v30 = vadd.f32 %v1248_v38, %v2331_v8  ;;  %v1250_v0 = vpop.f32.mrb[94].mxu0  ;;  %1536 = vmatprep.subr.bf16.mxu0 %v1413_v24  ;;  %v1322_v32 = vadd.f32 %v1321_v5, %v2331_v8  ;;  %v1323_v34 = vpop.f32.mrb[94].mxu1  ;;  %1579 = vmatprep.subr.bf16.mxu1 %v1415_v26 }
 0x309   :  { %v1251_v33 = vadd.f32 %v1250_v0, %v2333_v42  ;;  %v1252_v36 = vpop.f32.mrb[95].mxu0  ;;  %1537 = vmatpush1.bf16.msra.mxu0 %v1412_v22  ;;  %v1324_v39 = vadd.f32 %v1323_v34, %v2333_v42  ;;  %v1325_v43 = vpop.f32.mrb[95].mxu1  ;;  %1580 = vmatpush1.bf16.msra.mxu1 %v1414_v23  ;;  %v1380_v44 = vmax.f32 %v1247_v27, 0.0  ;;  %v1382_v47 = vmax.f32 %v1320_v29, 0.0  ;;  %v1642_v22 = vld [vmem:[%s2532_s7] sm:$0x3] }
 0x30a   :  { %v1253_v4 = vadd.f32 %v1252_v36, %v2333_v42  ;;  %v1326_v46 = vadd.f32 %v1325_v43, %v2333_v42  ;;  %v1381_v48 = vmax.f32 %v1249_v30, 0.0  ;;  %v1383_v52 = vmax.f32 %v1322_v32, 0.0  ;;  %v1431_v42 = vpop.permute.xlu0 %1430  ;;  %s1961_s7 = smov [#allocation2]  }
 0x30b   :  { %v1388_v45 = vmax.f32 %v1251_v33, 0.0  ;;  %v1390_v49 = vmax.f32 %v1324_v39, 0.0  ;;  %s1842_s0 = sshll.u32 %s1961_s7, 4  ;;  %s1843_s0 = int_to_ptr.vmem [resolvable:$true] %s1842_s0 }
 0x30c   :  { %v1389_v8 = vmax.f32 %v1253_v4, 0.0  ;;  %v1391_v54 = vmax.f32 %v1326_v46, 0.0  ;;  %s1936_s10 = scalar_lea.vmem %s1843_s0, 512  ;;  %p1941_p1 = scmp.lt.s32.totalorder %s1843_s0, %s1843_s0 }
 0x30d   :  { %v1420_v53 = vpack.c.bf16 %v1388_v45, %v1380_v44  ;;  %v1422_v55 = vpack.c.bf16 %v1390_v49, %v1382_v47  ;;  %p1937_p0 = scmp.ne.s32.totalorder %s1843_s0, %s1936_s10  ;;  %p1942_p2 = scmp.lt.s32.totalorder %s1936_s10, %s1936_s10 }
 0x30e   :  { %v1421_v31 = vpack.c.bf16 %v1389_v8, %v1381_v48  ;;  %v1423_v56 = vpack.c.bf16 %v1391_v54, %v1383_v52 }
 0x30f   :  { %p1943_p3 = por %p1942_p2, %p1941_p1 }
 0x310   :  { %1538 = vmatprep.subr.bf16.mxu0 %v1421_v31  ;;  %1581 = vmatprep.subr.bf16.mxu1 %v1423_v56 }
 0x311   :  { %1539 = vmatpush1.bf16.msra.mxu0 %v1420_v53  ;;  %1582 = vmatpush1.bf16.msra.mxu1 %v1422_v55  ;;  %v1647_v53 = vpop.permute.xlu0 %1646  ;;  %p1944_p4 = pnand %p1943_p3, %p1937_p0 }
 0x314   :  { %1917 = vmatmul.mubr.msk.bf16.vlgmr.msra.gmra.mrb[100].mxu0 %vm635_vm1, %v2461_v16  ;;  %1918 = vmatmul.mubr.msk.bf16.vlgmr.msra.gmra.mrb[100].mxu1 %vm635_vm1, %v2461_v16 }
 0x315   :  { %1684 = vmatprep.mubr.bf16.mxu0 %v1960_v6  ;;  %1725 = vmatprep.mubr.bf16.mxu1 %v1960_v6 }
 0x3c7   :  { %v1480_v58 = vpop.f32.mrb[96].mxu0  ;;  %v1523_v60 = vpop.f32.mrb[96].mxu1 }
 0x3c8   :  { %v1481_v59 = vadd.f32 %v1480_v58, %v1431_v42  ;;  %v1482_v51 = vpop.f32.mrb[97].mxu0  ;;  %v1524_v18 = vadd.f32 %v1523_v60, %v1431_v42  ;;  %v1525_v62 = vpop.f32.mrb[97].mxu1 }
 0x3c9   :  { %v1483_v61 = vadd.f32 %v1482_v51, %v1431_v42  ;;  %v1484_v50 = vpop.f32.mrb[98].mxu0  ;;  %v1526_v63 = vadd.f32 %v1525_v62, %v1431_v42  ;;  %v1527_v7 = vpop.f32.mrb[98].mxu1 }
 0x3ca   :  { %v1485_v40 = vadd.f32 %v1484_v50, %v1436_v57  ;;  %v1486_v1 = vpop.f32.mrb[99].mxu0  ;;  %v1528_v2 = vadd.f32 %v1527_v7, %v1436_v57  ;;  %v1529_v3 = vpop.f32.mrb[99].mxu1  ;;  %v1618_v9 = vmax.f32 %v1481_v59, 0.0  ;;  %v1620_v11 = vmax.f32 %v1524_v18, 0.0 }
 0x3cb   :  { %v1487_v16 = vadd.f32 %v1486_v1, %v1436_v57  ;;  %v1530_v10 = vadd.f32 %v1529_v3, %v1436_v57  ;;  %v1619_v12 = vmax.f32 %v1483_v61, 0.0  ;;  %v1621_v15 = vmax.f32 %v1526_v63, 0.0 }
 0x3cc   :  { %v1626_v35 = vmax.f32 %v1485_v40, 0.0  ;;  %v1628_v13 = vmax.f32 %v1528_v2, 0.0 }
 0x3cd   :  { %v1627_v14 = vmax.f32 %v1487_v16, 0.0  ;;  %v1629_v19 = vmax.f32 %v1530_v10, 0.0 }
 0x3ce   :  { %v1634_v17 = vpack.c.bf16 %v1626_v35, %v1618_v9  ;;  %v1636_v20 = vpack.c.bf16 %v1628_v13, %v1620_v11 }
 0x3cf   :  { %v1635_v41 = vpack.c.bf16 %v1627_v14, %v1619_v12  ;;  %v1637_v21 = vpack.c.bf16 %v1629_v19, %v1621_v15 }
 0x3d1   :  { %1652 = vmatprep.subr.bf16.mxu0 %v1635_v41  ;;  %1693 = vmatprep.subr.bf16.mxu1 %v1637_v21 }
 0x3d2   :  { %1653 = vmatpush1.bf16.msra.mxu0 %v1634_v17  ;;  %1694 = vmatpush1.bf16.msra.mxu1 %v1636_v20 }
 0x3d5   :  { %1919 = vmatmul.mubr.msk.bf16.vlgmr.msra.gmra.mrb[104].mxu0 %vm158_vm0, %v1642_v22  ;;  %1920 = vmatmul.mubr.msk.bf16.vlgmr.msra.gmra.mrb[104].mxu1 %vm158_vm0, %v1642_v22 }
 0x3d6   :  { %1766 = vmatprep.mubr.bf16.mxu0 %v1960_v6  ;;  %1807 = vmatprep.mubr.bf16.mxu1 %v1960_v6 }
 0x3e7   :  { %v1566_v37 = vpop.f32.mrb[100].mxu0  ;;  %v1609_v24 = vpop.f32.mrb[100].mxu1 }
 0x3e8   :  { %v1567_v23 = vadd.f32 %v1566_v37, %v1431_v42  ;;  %v1568_v25 = vpop.f32.mrb[101].mxu0  ;;  %v1610_v26 = vadd.f32 %v1609_v24, %v1431_v42  ;;  %v1611_v28 = vpop.f32.mrb[101].mxu1 }
 0x3e9   :  { %v1569_v27 = vadd.f32 %v1568_v25, %v1431_v42  ;;  %v1570_v38 = vpop.f32.mrb[102].mxu0  ;;  %v1612_v29 = vadd.f32 %v1611_v28, %v1431_v42  ;;  %v1613_v5 = vpop.f32.mrb[102].mxu1 }
 0x3ea   :  { %v1571_v30 = vadd.f32 %v1570_v38, %v1436_v57  ;;  %v1572_v0 = vpop.f32.mrb[103].mxu0  ;;  %v1614_v32 = vadd.f32 %v1613_v5, %v1436_v57  ;;  %v1615_v34 = vpop.f32.mrb[103].mxu1  ;;  %v1622_v36 = vmax.f32 %v1567_v23, 0.0  ;;  %v1624_v43 = vmax.f32 %v1610_v26, 0.0 }
 0x3eb   :  { %v1573_v33 = vadd.f32 %v1572_v0, %v1436_v57  ;;  %v1616_v4 = vadd.f32 %v1615_v34, %v1436_v57  ;;  %v1623_v6 = vmax.f32 %v1569_v27, 0.0  ;;  %v1625_v46 = vmax.f32 %v1612_v29, 0.0 }
 0x3ec   :  { %v1630_v39 = vmax.f32 %v1571_v30, 0.0  ;;  %v1632_v44 = vmax.f32 %v1614_v32, 0.0 }
 0x3ed   :  { %v1631_v45 = vmax.f32 %v1573_v33, 0.0  ;;  %v1633_v48 = vmax.f32 %v1616_v4, 0.0 }
 0x3ee   :  { %v1638_v47 = vpack.c.bf16 %v1630_v39, %v1622_v36  ;;  %v1640_v49 = vpack.c.bf16 %v1632_v44, %v1624_v43 }
 0x3ef   :  { %v1639_v8 = vpack.c.bf16 %v1631_v45, %v1623_v6  ;;  %v1641_v52 = vpack.c.bf16 %v1633_v48, %v1625_v46 }
 0x3f1   :  { %1734 = vmatprep.subr.bf16.mxu0 %v1639_v8  ;;  %1775 = vmatprep.subr.bf16.mxu1 %v1641_v52 }
 0x3f2   :  { %1735 = vmatpush1.bf16.msra.mxu0 %v1638_v47  ;;  %1776 = vmatpush1.bf16.msra.mxu1 %v1640_v49 }
 0x3f5   :  { %1921 = vmatmul.mubr.msk.bf16.vlgmr.msra.gmra.mrb[108].mxu0 %vm158_vm0, %v1642_v22  ;;  %1922 = vmatmul.mubr.msk.bf16.vlgmr.msra.gmra.mrb[108].mxu1 %vm158_vm0, %v1642_v22 }
 0x4a8   :  { %v1686_v54 = vpop.f32.mrb[104].mxu0  ;;  %v1727_v31 = vpop.f32.mrb[104].mxu1 }
 0x4a9   :  { %v1687_v55 = vadd.f32 %v1686_v54, %v1647_v53  ;;  %v1688_v56 = vpop.f32.mrb[105].mxu0  ;;  %v1728_v42 = vadd.f32 %v1727_v31, %v1647_v53  ;;  %v1729_v58 = vpop.f32.mrb[105].mxu1 }
 0x4aa   :  { %v1689_v57 = vadd.f32 %v1688_v56, %v1647_v53  ;;  %v1690_v59 = vpop.f32.mrb[106].mxu0  ;;  %v1730_v60 = vadd.f32 %v1729_v58, %v1647_v53  ;;  %v1731_v51 = vpop.f32.mrb[106].mxu1 }
 0x4ab   :  { %v1691_v18 = vpop.f32.mrb[107].mxu0  ;;  %v1732_v62 = vpop.f32.mrb[107].mxu1 }
 0x4ac   :  { %v1824_v61 = vcombine.low %v1687_v55, %v1689_v57  ;;  %v1825_v50 = vcombine.low %v1728_v42, %v1730_v60 }
 0x4ae   :  { %1832 = vst [vmem:[#allocation2] sm:$0xff] %v1824_v61  ;;  %1833 = vst [vmem:[#allocation2 + $0x8] sm:$0xff] %v1825_v50 }
 0x4c8   :  { %v1768_v63 = vpop.f32.mrb[108].mxu0  ;;  %v1809_v7 = vpop.f32.mrb[108].mxu1 }
 0x4c9   :  { %v1769_v40 = vadd.f32 %v1768_v63, %v1647_v53  ;;  %v1770_v1 = vpop.f32.mrb[109].mxu0  ;;  %v1810_v2 = vadd.f32 %v1809_v7, %v1647_v53  ;;  %v1811_v3 = vpop.f32.mrb[109].mxu1 }
 0x4ca   :  { %v1771_v16 = vadd.f32 %v1770_v1, %v1647_v53  ;;  %v1772_v9 = vpop.f32.mrb[110].mxu0  ;;  %v1812_v35 = vadd.f32 %v1811_v3, %v1647_v53  ;;  %v1813_v10 = vpop.f32.mrb[110].mxu1 }
 0x4cb   :  { %v1773_v11 = vpop.f32.mrb[111].mxu0  ;;  %v1814_v13 = vpop.f32.mrb[111].mxu1 }
 0x4cc   :  { %v1826_v12 = vcombine.low %v1769_v40, %v1771_v16  ;;  %v1827_v14 = vcombine.low %v1810_v2, %v1812_v35 }
 0x4ce   :  { %1834 = vst [vmem:[#allocation2 + $0x10] sm:$0xff] %v1826_v12  ;;  %1835 = vst [vmem:[#allocation2 + $0x18] sm:$0xff] %v1827_v14 }
 0x4cf   :  { %1947 = shalt.err (!%p1944_p4)
}
 0x4d0   :  { %s1948_s13 = scalar_lea.hbm %s2534_s9, 512 }
 0x4d1   :  { %p1949_p5 = scmp.ne.s32.totalorder %s2534_s9, %s1948_s13  ;;  %p1952_p6 = scmp.lt.u32.totalorder %s1948_s13, %s2534_s9 }
 0x4d3   :  { %p1954_p7 = pnand %p1952_p6, %p1949_p5 }
 0x4d5   :  { %1957 = shalt.err (!%p1954_p7)
}
 0x4d6   :  { %1845 = dma.vmem_to_hbm [thread:$0]  %s1843_s0, 512, %s2534_s9, [#allocation3]  }
 0x4d7   :  { %1958 = dma.done.wait [#allocation3], 512  }
 0x4d8   :  { %1959 = vsyncadd [#allocation3], 4294966784 }
 0x4d9   :  { %1849 = vsyncpa [#allocation3], 1 }

</bundles_post_ra>
